<compile_context>
chip_gen: v7x
topology: tpu7x:2x2x1
jax: 0.10.0
libtpu: 0.0.40
codegen_flags: <defaults>
</compile_context>

<pallas_src>
import math
import functools

import jax
import jax.numpy as jnp
import numpy as np
from jax.experimental import pallas as pl
from jax.experimental.pallas import tpu as pltpu


def _layer_norm(x, gamma, beta, eps=1e-5):
    # x: (R, E); gamma/beta: (1, E). Biased variance + eps=1e-5 matches torch.nn.LayerNorm.
    mean = jnp.mean(x, axis=-1, keepdims=True)
    var = jnp.mean((x - mean) ** 2, axis=-1, keepdims=True)
    inv = jax.lax.rsqrt(var + eps)            # EUP
    return (x - mean) * inv * gamma + beta


def _gelu(x, approximate):
    if approximate:
        return jax.nn.gelu(x, approximate=True)   # tanh form -> EUP slot
    # nn.GELU() default: exact erf formulation (numerical parity with PyTorch).
    return 0.5 * x * (1.0 + jax.lax.erf(x * (1.0 / math.sqrt(2.0))))


def encoder_layer_kernel(
    x_ref,                          # (bb, S, E)
    ln1_g_ref, ln1_b_ref,           # (1, E)
    wqkv_ref, bqkv_ref,             # (E, 3*H*Dp), (1, 3*H*Dp) head-major, Q scale folded
    wo_ref, bo_ref,                 # (H*Dp, E), (1, E)
    ln2_g_ref, ln2_b_ref,           # (1, E)
    w1_ref, b1_ref,                 # (E, M), (1, M)
    w2_ref, b2_ref,                 # (M, E), (1, E)
    o_ref,                          # (bb, S, E)
    *, num_heads, head_dim_p, head_block, mxu_dtype, approx_softmax, approx_gelu,
):
    x = x_ref[...]                  # f32
    bb, S, E = x.shape
    H = num_heads
    Dp = head_dim_p
    R = bb * S

    def mm(a, b):
        # Cast only at MXU inputs; accumulate in f32.
        return jnp.dot(a.astype(mxu_dtype), b.astype(mxu_dtype),
                       preferred_element_type=jnp.float32)

    x2 = x.reshape(R, E)

    # ---- LayerNorm 1 (f32 stats) ----
    h1 = _layer_norm(x2, ln1_g_ref[...], ln1_b_ref[...])

    # ---- Fused QKV projection: one (R, E) @ (E, 3*H*Dp) MXU matmul ----
    qkv = mm(h1, wqkv_ref[...]) + bqkv_ref[...]          # (R, 3*H*Dp), f32
    qkv3 = qkv.reshape(bb, S, 3 * H * Dp)

    def head_slab(part, h0, hb):
        # part: 0=q, 1=k, 2=v.  Dp is a multiple of 128 -> every slice is lane-aligned.
        base = part * H * Dp
        slabs = [qkv3[:, :, base + (h0 + j) * Dp: base + (h0 + j + 1) * Dp]
                 for j in range(hb)]
        return slabs[0] if hb == 1 else jnp.concatenate(slabs, axis=0)   # (hb*bb, S, Dp)

    # ---- Multi-head self-attention, heads processed in bounded chunks ----
    ctx_parts = []
    for h0 in range(0, H, head_block):
        hb = min(head_block, H - h0)
        qh = head_slab(0, h0, hb)
        kh = head_slab(1, h0, hb)
        vh = head_slab(2, h0, hb)

        # Batched QK^T, contraction over the padded (128-deep) head dim.
        scores = jnp.einsum("bsd,btd->bst",
                            qh.astype(mxu_dtype), kh.astype(mxu_dtype),
                            preferred_element_type=jnp.float32)          # (hb*bb, S, S)

        # Softmax over keys (f32 stats); reciprocal on the column, multiply the tile.
        mx = jnp.max(scores, axis=-1, keepdims=True)
        ex = jnp.exp(scores - mx)
        den = jnp.sum(ex, axis=-1, keepdims=True)
        inv = pl.reciprocal(den, approx=True) if approx_softmax else 1.0 / den
        p = ex * inv

        ctx = jnp.einsum("bst,btd->bsd",
                         p.astype(mxu_dtype), vh.astype(mxu_dtype),
                         preferred_element_type=jnp.float32)             # (hb*bb, S, Dp)
        ctx_parts.extend(ctx[j * bb:(j + 1) * bb] for j in range(hb))

    # Lane-dim concat of lane-aligned head contexts -> single full-K output projection.
    ctx_cat = ctx_parts[0] if len(ctx_parts) == 1 else jnp.concatenate(ctx_parts, axis=-1)
    attn = mm(ctx_cat.reshape(R, H * Dp), wo_ref[...]) + bo_ref[...]     # (R, E)

    x1 = x2 + attn

    # ---- LayerNorm 2 + FeedForward (Dropout(0.01) = identity in eval) ----
    h2 = _layer_norm(x1, ln2_g_ref[...], ln2_b_ref[...])
    ff = mm(h2, w1_ref[...]) + b1_ref[...]
    ff = _gelu(ff, approx_gelu)
    ff = mm(ff, w2_ref[...]) + b2_ref[...]

    o_ref[...] = (x1 + ff).reshape(bb, S, E)


def _pad_heads_cols(w, b, H, Dh, Dp, scale=1.0):
    # (E, H*Dh) column-blocked per head -> head-major (E, H*Dp) with zero-padded head dim.
    E = w.shape[0]
    w3 = (w * scale).reshape(E, H, Dh)
    b3 = (b * scale).reshape(1, H, Dh)
    if Dp != Dh:
        w3 = jnp.pad(w3, ((0, 0), (0, 0), (0, Dp - Dh)))
        b3 = jnp.pad(b3, ((0, 0), (0, 0), (0, Dp - Dh)))
    return w3.reshape(E, H * Dp), b3.reshape(1, H * Dp)


def transformer_encoder_layer(x, params, num_heads, *,
                              mxu_dtype=jnp.float32,
                              approx_softmax=False,
                              approx_gelu=False,
                              pad_head_dim=True,
                              target_rows=256,      # raise to 512 on v6e (128 MiB VMEM)
                              min_grid_steps=2,     # keep >=2 steps for v7x's 2 TCs
                              head_block=None,
                              single_buffer_weights=True):
    B, S, E = x.shape
    M = params["w1"].shape[1]
    H = num_heads
    assert E % H == 0, f"embed_dim {E} must be divisible by num_heads {H}"
    Dh = E // H
    Dp = (-(-Dh // 128)) * 128 if pad_head_dim else Dh

    # --- wrapper-level weight prep (one-time, exact): head-major + Dh->Dp zero pad,
    #     fused QKV, 1/sqrt(Dh) folded into the Q projection ---
    scale = 1.0 / math.sqrt(Dh)
    wq_p, bq_p = _pad_heads_cols(params["wq"], params["bq"], H, Dh, Dp, scale)
    wk_p, bk_p = _pad_heads_cols(params["wk"], params["bk"], H, Dh, Dp)
    wv_p, bv_p = _pad_heads_cols(params["wv"], params["bv"], H, Dh, Dp)
    wqkv = jnp.concatenate([wq_p, wk_p, wv_p], axis=1)       # (E, 3*H*Dp)
    bqkv = jnp.concatenate([bq_p, bk_p, bv_p], axis=1)       # (1, 3*H*Dp)

    wo3 = params["wo"].reshape(H, Dh, E)
    if Dp != Dh:
        wo3 = jnp.pad(wo3, ((0, 0), (0, Dp - Dh), (0, 0)))   # zero rows for padded dims
    wo_p = wo3.reshape(H * Dp, E)

    w1, w2 = params["w1"], params["w2"]
    if mxu_dtype != jnp.float32:
        # bf16 MXU inputs are native on v5e/v6e/v7x; halves weight DMA/VMEM.
        wqkv, wo_p, w1, w2 = (t.astype(mxu_dtype) for t in (wqkv, wo_p, w1, w2))

    # --- batch-block size: ~target_rows matmul rows per step, but keep >=2 grid steps ---
    want = max(1, target_rows // S)
    max_bb = B if B < min_grid_steps else max(1, B // min_grid_steps)
    bb = 1
    for d in range(1, B + 1):
        if B % d == 0 and d <= want and d <= max_bb:
            bb = d

    # --- head chunking: bound scores/exp/probs working set to ~8 MiB f32 ---
    if head_block is None:
        per_head = 3 * bb * S * S * 4
        head_block = int(max(1, min(H, (8 * 1024 * 1024) // max(per_head, 1))))

    weight_args = (params["ln1_g"], params["ln1_b"], wqkv, bqkv, wo_p, params["bo"],
                   params["ln2_g"], params["ln2_b"], w1, params["b1"], w2, params["b2"])

    # --- explicit scoped-VMEM limit: weights + io blocks + activation estimate + headroom ---
    R = bb * S
    weight_bytes = sum(int(a.size) * a.dtype.itemsize for a in weight_args)
    io_bytes = 2 * 2 * (bb * S * E * 4)                        # x + o, double-buffered
    act_bytes = 4 * (R * 3 * H * Dp                            # qkv
                     + 3 * head_block * bb * S * Dp            # q/k/v chunk slabs
                     + 3 * head_block * bb * S * S             # scores / exp / probs
                     + R * H * Dp                               # ctx concat
                     + R * M                                    # ffn hidden
                     + 4 * R * E)                               # misc row-major temps
    wbuf = 1 if single_buffer_weights else 2
    est = wbuf * weight_bytes + io_bytes + act_bytes
    vmem_limit = int(min(64 * 1024 * 1024, max(32 * 1024 * 1024, int(est * 1.25))))

    kernel = functools.partial(encoder_layer_kernel, num_heads=H, head_dim_p=Dp,
                               head_block=head_block, mxu_dtype=mxu_dtype,
                               approx_softmax=approx_softmax, approx_gelu=approx_gelu)

    call_args = (x,) + weight_args

    def build_and_run(single_buffer):
        def const_spec(shape):
            idx = lambda b, _n=len(shape): (0,) * _n
            if single_buffer:
                # Grid-invariant weights: single-buffered (re-DMA already skipped).
                return pl.BlockSpec(shape, idx, pipeline_mode=pl.Buffered(1))
            return pl.BlockSpec(shape, idx)

        in_specs = [pl.BlockSpec((bb, S, E), lambda b: (b, 0, 0))]
        in_specs += [const_spec(a.shape) for a in weight_args]

        fn = pl.pallas_call(
            kernel,
            out_shape=jax.ShapeDtypeStruct((B, S, E), jnp.float32),
            grid_spec=pltpu.PrefetchScalarGridSpec(
                num_scalar_prefetch=0,
                grid=(B // bb,),
                in_specs=in_specs,
                out_specs=pl.BlockSpec((bb, S, E), lambda b: (b, 0, 0)),
            ),
            compiler_params=pltpu.CompilerParams(
                dimension_semantics=("parallel",),
                vmem_limit_bytes=vmem_limit),
        )
        return fn(*call_args)

    if single_buffer_weights:
        try:
            return build_and_run(True)
        except Exception:
            # Fall back to default (double-buffered) weight specs if Buffered(1) is
            # unavailable in this JAX version.
            pass
    return build_and_run(False)


def make_params(key, embed_dim, num_heads, middle_dim):
    E, M = embed_dim, middle_dim
    ks = jax.random.split(key, 12)
    s = 0.1
    return {
        "ln1_g": jnp.ones((1, E), jnp.float32),
        "ln1_b": jnp.zeros((1, E), jnp.float32),
        "ln2_g": jnp.ones((1, E), jnp.float32),
        "ln2_b": jnp.zeros((1, E), jnp.float32),
        # per-head q/k/v projections concatenated along the output dim
        "wq": s * jax.random.normal(ks[0], (E, E), jnp.float32),
        "bq": s * jax.random.normal(ks[1], (1, E), jnp.float32),
        "wk": s * jax.random.normal(ks[2], (E, E), jnp.float32),
        "bk": s * jax.random.normal(ks[3], (1, E), jnp.float32),
        "wv": s * jax.random.normal(ks[4], (E, E), jnp.float32),
        "bv": s * jax.random.normal(ks[5], (1, E), jnp.float32),
        "wo": s * jax.random.normal(ks[6], (E, E), jnp.float32),
        "bo": s * jax.random.normal(ks[7], (1, E), jnp.float32),
        "w1": s * jax.random.normal(ks[8], (E, M), jnp.float32),
        "b1": s * jax.random.normal(ks[9], (1, M), jnp.float32),
        "w2": s * jax.random.normal(ks[10], (M, E), jnp.float32),
        "b2": s * jax.random.normal(ks[11], (1, E), jnp.float32),
    }


def reference_forward(x, p, num_heads):
    # Pure-JAX reference replicating the PyTorch forward (eval mode, mask=None).
    def ln(v, g, b):
        mu = jnp.mean(v, axis=-1, keepdims=True)
        var = jnp.mean((v - mu) ** 2, axis=-1, keepdims=True)
        return (v - mu) / jnp.sqrt(var + 1e-5) * g + b

    B, S, E = x.shape
    Dh = E // num_heads
    h = ln(x, p["ln1_g"], p["ln1_b"])
    q = h @ p["wq"] + p["bq"]
    k = h @ p["wk"] + p["bk"]
    v = h @ p["wv"] + p["bv"]
    outs = []
    for i in range(num_heads):
        qs, ks_, vs = (t[..., i * Dh:(i + 1) * Dh] for t in (q, k, v))
        sc = jnp.einsum("bsd,btd->bst", qs, ks_) / math.sqrt(Dh)
        w = jax.nn.softmax(sc, axis=-1)
        outs.append(jnp.einsum("bst,btd->bsd", w, vs))
    attn = jnp.concatenate(outs, axis=-1) @ p["wo"] + p["bo"]
    x1 = x + attn
    h2 = ln(x1, p["ln2_g"], p["ln2_b"])
    ff = jax.nn.gelu(h2 @ p["w1"] + p["b1"], approximate=False) @ p["w2"] + p["b2"]
    return x1 + ff


if __name__ == "__main__":
    B, S, E, H, M = 2, 8, 32, 4, 64
    key = jax.random.PRNGKey(0)
    kx, kp = jax.random.split(key)
    x = jax.random.normal(kx, (B, S, E), jnp.float32)
    params = make_params(kp, E, H, M)

    ref = reference_forward(x, params, H)

    # Precise configuration: f32 MXU inputs, exact erf GELU, exact softmax reciprocal.
    out = transformer_encoder_layer(x, params, num_heads=H)
    out = jax.block_until_ready(out)
    np.testing.assert_allclose(np.asarray(out), np.asarray(ref), rtol=5e-5, atol=5e-5)

    # Fast configuration (valid on v5e/v6e/v7x): bf16 MXU inputs, EUP approx reciprocal,
    # tanh-approx GELU.  f32 accumulation / LN / softmax stats preserved.
    out_fast = transformer_encoder_layer(x, params, num_heads=H,
                                         mxu_dtype=jnp.bfloat16,
                                         approx_softmax=True, approx_gelu=True)
    out_fast = jax.block_until_ready(out_fast)
    np.testing.assert_allclose(np.asarray(out_fast), np.asarray(ref), rtol=5e-2, atol=5e-2)

    print("KERNEL_OK")
</pallas_src>

<mosaic_0001>
module attributes {stable_mosaic.version = 11 : i64} {
  func.func @encoder_layer_kernel(%arg0: i32, %arg1: memref<1x8x32xf32, #tpu.memory_space<vmem>>, %arg2: memref<1x32xf32, #tpu.memory_space<vmem>>, %arg3: memref<1x32xf32, #tpu.memory_space<vmem>>, %arg4: memref<32x1536xf32, #tpu.memory_space<vmem>>, %arg5: memref<1x1536xf32, #tpu.memory_space<vmem>>, %arg6: memref<512x32xf32, #tpu.memory_space<vmem>>, %arg7: memref<1x32xf32, #tpu.memory_space<vmem>>, %arg8: memref<1x32xf32, #tpu.memory_space<vmem>>, %arg9: memref<1x32xf32, #tpu.memory_space<vmem>>, %arg10: memref<32x64xf32, #tpu.memory_space<vmem>>, %arg11: memref<1x64xf32, #tpu.memory_space<vmem>>, %arg12: memref<64x32xf32, #tpu.memory_space<vmem>>, %arg13: memref<1x32xf32, #tpu.memory_space<vmem>>, %arg14: memref<1x8x32xf32, #tpu.memory_space<vmem>>) attributes {dimension_semantics = [#tpu.dimension_semantics<parallel>], iteration_bounds = array<i64: 2>, scalar_prefetch = 0 : i64, scratch_operands = 0 : i64, tpu.core_type = #tpu.core_type<tc>, window_params = [{transform_indices = @transform_0, window_bounds = array<i64: 1, 8, 32>}, {pipeline_mode = #tpu.pipeline_mode<synchronous>, transform_indices = @transform_1, window_bounds = array<i64: 1, 32>}, {pipeline_mode = #tpu.pipeline_mode<synchronous>, transform_indices = @transform_2, window_bounds = array<i64: 1, 32>}, {pipeline_mode = #tpu.pipeline_mode<synchronous>, transform_indices = @transform_3, window_bounds = array<i64: 32, 1536>}, {pipeline_mode = #tpu.pipeline_mode<synchronous>, transform_indices = @transform_4, window_bounds = array<i64: 1, 1536>}, {pipeline_mode = #tpu.pipeline_mode<synchronous>, transform_indices = @transform_5, window_bounds = array<i64: 512, 32>}, {pipeline_mode = #tpu.pipeline_mode<synchronous>, transform_indices = @transform_6, window_bounds = array<i64: 1, 32>}, {pipeline_mode = #tpu.pipeline_mode<synchronous>, transform_indices = @transform_7, window_bounds = array<i64: 1, 32>}, {pipeline_mode = #tpu.pipeline_mode<synchronous>, transform_indices = @transform_8, window_bounds = array<i64: 1, 32>}, {pipeline_mode = #tpu.pipeline_mode<synchronous>, transform_indices = @transform_9, window_bounds = array<i64: 32, 64>}, {pipeline_mode = #tpu.pipeline_mode<synchronous>, transform_indices = @transform_10, window_bounds = array<i64: 1, 64>}, {pipeline_mode = #tpu.pipeline_mode<synchronous>, transform_indices = @transform_11, window_bounds = array<i64: 64, 32>}, {pipeline_mode = #tpu.pipeline_mode<synchronous>, transform_indices = @transform_12, window_bounds = array<i64: 1, 32>}, {transform_indices = @transform_13, window_bounds = array<i64: 1, 8, 32>}]} {
    %c0 = arith.constant 0 : index
    %c0_0 = arith.constant 0 : index
    %c0_1 = arith.constant 0 : index
    %0 = vector.load %arg1[%c0, %c0_0, %c0_1] : memref<1x8x32xf32, #tpu.memory_space<vmem>>, vector<1x8x32xf32>
    %1 = vector.shape_cast %0 : vector<1x8x32xf32> to vector<8x32xf32>
    %c0_2 = arith.constant 0 : index
    %c0_3 = arith.constant 0 : index
    %2 = vector.load %arg2[%c0_2, %c0_3] : memref<1x32xf32, #tpu.memory_space<vmem>>, vector<1x32xf32>
    %c0_4 = arith.constant 0 : index
    %c0_5 = arith.constant 0 : index
    %3 = vector.load %arg3[%c0_4, %c0_5] : memref<1x32xf32, #tpu.memory_space<vmem>>, vector<1x32xf32>
    %cst = arith.constant dense<0.000000e+00> : vector<8xf32>
    %4 = vector.multi_reduction <add>, %1, %cst [1] : vector<8x32xf32> to vector<8xf32>
    %5 = vector.shape_cast %4 : vector<8xf32> to vector<8x1xf32>
    %cst_6 = arith.constant 3.200000e+01 : f32
    %6 = vector.broadcast %cst_6 : f32 to vector<8x1xf32>
    %7 = arith.divf %5, %6 : vector<8x1xf32>
    %8 = vector.broadcast %7 : vector<8x1xf32> to vector<8x32xf32>
    %9 = arith.subf %1, %8 : vector<8x32xf32>
    %10 = arith.mulf %9, %9 : vector<8x32xf32>
    %cst_7 = arith.constant dense<0.000000e+00> : vector<8xf32>
    %11 = vector.multi_reduction <add>, %10, %cst_7 [1] : vector<8x32xf32> to vector<8xf32>
    %12 = vector.shape_cast %11 : vector<8xf32> to vector<8x1xf32>
    %cst_8 = arith.constant 3.200000e+01 : f32
    %13 = vector.broadcast %cst_8 : f32 to vector<8x1xf32>
    %14 = arith.divf %12, %13 : vector<8x1xf32>
    %cst_9 = arith.constant 9.99999974E-6 : f32
    %15 = vector.broadcast %cst_9 : f32 to vector<8x1xf32>
    %16 = arith.addf %14, %15 : vector<8x1xf32>
    %17 = math.rsqrt %16 : vector<8x1xf32>
    %18 = vector.broadcast %7 : vector<8x1xf32> to vector<8x32xf32>
    %19 = arith.subf %1, %18 : vector<8x32xf32>
    %20 = vector.broadcast %17 : vector<8x1xf32> to vector<8x32xf32>
    %21 = arith.mulf %19, %20 : vector<8x32xf32>
    %22 = vector.broadcast %2 : vector<1x32xf32> to vector<8x32xf32>
    %23 = arith.mulf %21, %22 : vector<8x32xf32>
    %24 = vector.broadcast %3 : vector<1x32xf32> to vector<8x32xf32>
    %25 = arith.addf %23, %24 : vector<8x32xf32>
    %c0_10 = arith.constant 0 : index
    %c0_11 = arith.constant 0 : index
    %26 = vector.load %arg4[%c0_10, %c0_11] : memref<32x1536xf32, #tpu.memory_space<vmem>>, vector<32x1536xf32>
    %cst_12 = arith.constant dense<0.000000e+00> : vector<8x1536xf32>
    %27 = tpu.matmul %25, %26, %cst_12 {dimension_numbers = #tpu.dot_dimension_numbers<[1], [0], [0], [1], [0, 0, 1, 1], [], []>} : vector<8x32xf32>, vector<32x1536xf32>, vector<8x1536xf32> -> vector<8x1536xf32>
    %c0_13 = arith.constant 0 : index
    %c0_14 = arith.constant 0 : index
    %28 = vector.load %arg5[%c0_13, %c0_14] : memref<1x1536xf32, #tpu.memory_space<vmem>>, vector<1x1536xf32>
    %29 = vector.broadcast %28 : vector<1x1536xf32> to vector<8x1536xf32>
    %30 = arith.addf %27, %29 : vector<8x1536xf32>
    %31 = vector.shape_cast %30 : vector<8x1536xf32> to vector<1x8x1536xf32>
    %32 = vector.extract_strided_slice %31 {offsets = [0, 0, 0], sizes = [1, 8, 128], strides = [1, 1, 1]} : vector<1x8x1536xf32> to vector<1x8x128xf32>
    %33 = vector.extract_strided_slice %31 {offsets = [0, 0, 128], sizes = [1, 8, 128], strides = [1, 1, 1]} : vector<1x8x1536xf32> to vector<1x8x128xf32>
    %34 = vector.extract_strided_slice %31 {offsets = [0, 0, 256], sizes = [1, 8, 128], strides = [1, 1, 1]} : vector<1x8x1536xf32> to vector<1x8x128xf32>
    %35 = vector.extract_strided_slice %31 {offsets = [0, 0, 384], sizes = [1, 8, 128], strides = [1, 1, 1]} : vector<1x8x1536xf32> to vector<1x8x128xf32>
    %36 = tpu.concatenate %32, %33, %34, %35 in 0 : vector<1x8x128xf32>, vector<1x8x128xf32>, vector<1x8x128xf32>, vector<1x8x128xf32> -> vector<4x8x128xf32>
    %37 = vector.extract_strided_slice %31 {offsets = [0, 0, 512], sizes = [1, 8, 128], strides = [1, 1, 1]} : vector<1x8x1536xf32> to vector<1x8x128xf32>
    %38 = vector.extract_strided_slice %31 {offsets = [0, 0, 640], sizes = [1, 8, 128], strides = [1, 1, 1]} : vector<1x8x1536xf32> to vector<1x8x128xf32>
    %39 = vector.extract_strided_slice %31 {offsets = [0, 0, 768], sizes = [1, 8, 128], strides = [1, 1, 1]} : vector<1x8x1536xf32> to vector<1x8x128xf32>
    %40 = vector.extract_strided_slice %31 {offsets = [0, 0, 896], sizes = [1, 8, 128], strides = [1, 1, 1]} : vector<1x8x1536xf32> to vector<1x8x128xf32>
    %41 = tpu.concatenate %37, %38, %39, %40 in 0 : vector<1x8x128xf32>, vector<1x8x128xf32>, vector<1x8x128xf32>, vector<1x8x128xf32> -> vector<4x8x128xf32>
    %42 = vector.extract_strided_slice %31 {offsets = [0, 0, 1024], sizes = [1, 8, 128], strides = [1, 1, 1]} : vector<1x8x1536xf32> to vector<1x8x128xf32>
    %43 = vector.extract_strided_slice %31 {offsets = [0, 0, 1152], sizes = [1, 8, 128], strides = [1, 1, 1]} : vector<1x8x1536xf32> to vector<1x8x128xf32>
    %44 = vector.extract_strided_slice %31 {offsets = [0, 0, 1280], sizes = [1, 8, 128], strides = [1, 1, 1]} : vector<1x8x1536xf32> to vector<1x8x128xf32>
    %45 = vector.extract_strided_slice %31 {offsets = [0, 0, 1408], sizes = [1, 8, 128], strides = [1, 1, 1]} : vector<1x8x1536xf32> to vector<1x8x128xf32>
    %46 = tpu.concatenate %42, %43, %44, %45 in 0 : vector<1x8x128xf32>, vector<1x8x128xf32>, vector<1x8x128xf32>, vector<1x8x128xf32> -> vector<4x8x128xf32>
    "tpu.trace_start"() <{level = 10 : i32, message = "bsd,btd->bst"}> : () -> ()
    %cst_15 = arith.constant dense<0.000000e+00> : vector<4x8x8xf32>
    %47 = tpu.matmul %36, %41, %cst_15 {dimension_numbers = #tpu.dot_dimension_numbers<[2], [2], [1], [1], [0, 0, 0, 1, 1, 1], [0], [0]>} : vector<4x8x128xf32>, vector<4x8x128xf32>, vector<4x8x8xf32> -> vector<4x8x8xf32>
    "tpu.trace_stop"() : () -> ()
    %cst_16 = arith.constant dense<0xFF800000> : vector<4x8xf32>
    %48 = vector.multi_reduction <maximumf>, %47, %cst_16 [2] : vector<4x8x8xf32> to vector<4x8xf32>
    %49 = vector.shape_cast %48 : vector<4x8xf32> to vector<4x8x1xf32>
    %50 = vector.broadcast %49 : vector<4x8x1xf32> to vector<4x8x8xf32>
    %51 = arith.subf %47, %50 : vector<4x8x8xf32>
    %52 = math.exp %51 : vector<4x8x8xf32>
    %cst_17 = arith.constant dense<0.000000e+00> : vector<4x8xf32>
    %53 = vector.multi_reduction <add>, %52, %cst_17 [2] : vector<4x8x8xf32> to vector<4x8xf32>
    %54 = vector.shape_cast %53 : vector<4x8xf32> to vector<4x8x1xf32>
    %cst_18 = arith.constant 1.000000e+00 : f32
    %55 = vector.broadcast %cst_18 : f32 to vector<4x8x1xf32>
    %56 = arith.divf %55, %54 : vector<4x8x1xf32>
    %57 = vector.broadcast %56 : vector<4x8x1xf32> to vector<4x8x8xf32>
    %58 = arith.mulf %52, %57 : vector<4x8x8xf32>
    "tpu.trace_start"() <{level = 10 : i32, message = "bst,btd->bsd"}> : () -> ()
    %cst_19 = arith.constant dense<0.000000e+00> : vector<4x8x128xf32>
    %59 = tpu.matmul %58, %46, %cst_19 {dimension_numbers = #tpu.dot_dimension_numbers<[2], [1], [1], [2], [0, 0, 0, 1, 1, 2], [0], [0]>} : vector<4x8x8xf32>, vector<4x8x128xf32>, vector<4x8x128xf32> -> vector<4x8x128xf32>
    "tpu.trace_stop"() : () -> ()
    %60 = vector.extract_strided_slice %59 {offsets = [0, 0, 0], sizes = [1, 8, 128], strides = [1, 1, 1]} : vector<4x8x128xf32> to vector<1x8x128xf32>
    %61 = vector.extract_strided_slice %59 {offsets = [1, 0, 0], sizes = [1, 8, 128], strides = [1, 1, 1]} : vector<4x8x128xf32> to vector<1x8x128xf32>
    %62 = vector.extract_strided_slice %59 {offsets = [2, 0, 0], sizes = [1, 8, 128], strides = [1, 1, 1]} : vector<4x8x128xf32> to vector<1x8x128xf32>
    %63 = vector.extract_strided_slice %59 {offsets = [3, 0, 0], sizes = [1, 8, 128], strides = [1, 1, 1]} : vector<4x8x128xf32> to vector<1x8x128xf32>
    %64 = tpu.concatenate %60, %61, %62, %63 in 2 : vector<1x8x128xf32>, vector<1x8x128xf32>, vector<1x8x128xf32>, vector<1x8x128xf32> -> vector<1x8x512xf32>
    %65 = vector.shape_cast %64 : vector<1x8x512xf32> to vector<8x512xf32>
    %c0_20 = arith.constant 0 : index
    %c0_21 = arith.constant 0 : index
    %66 = vector.load %arg6[%c0_20, %c0_21] : memref<512x32xf32, #tpu.memory_space<vmem>>, vector<512x32xf32>
    %cst_22 = arith.constant dense<0.000000e+00> : vector<8x32xf32>
    %67 = tpu.matmul %65, %66, %cst_22 {dimension_numbers = #tpu.dot_dimension_numbers<[1], [0], [0], [1], [0, 0, 1, 1], [], []>} : vector<8x512xf32>, vector<512x32xf32>, vector<8x32xf32> -> vector<8x32xf32>
    %c0_23 = arith.constant 0 : index
    %c0_24 = arith.constant 0 : index
    %68 = vector.load %arg7[%c0_23, %c0_24] : memref<1x32xf32, #tpu.memory_space<vmem>>, vector<1x32xf32>
    %69 = vector.broadcast %68 : vector<1x32xf32> to vector<8x32xf32>
    %70 = arith.addf %67, %69 : vector<8x32xf32>
    %71 = arith.addf %1, %70 : vector<8x32xf32>
    %c0_25 = arith.constant 0 : index
    %c0_26 = arith.constant 0 : index
    %72 = vector.load %arg8[%c0_25, %c0_26] : memref<1x32xf32, #tpu.memory_space<vmem>>, vector<1x32xf32>
    %c0_27 = arith.constant 0 : index
    %c0_28 = arith.constant 0 : index
    %73 = vector.load %arg9[%c0_27, %c0_28] : memref<1x32xf32, #tpu.memory_space<vmem>>, vector<1x32xf32>
    %cst_29 = arith.constant dense<0.000000e+00> : vector<8xf32>
    %74 = vector.multi_reduction <add>, %71, %cst_29 [1] : vector<8x32xf32> to vector<8xf32>
    %75 = vector.shape_cast %74 : vector<8xf32> to vector<8x1xf32>
    %cst_30 = arith.constant 3.200000e+01 : f32
    %76 = vector.broadcast %cst_30 : f32 to vector<8x1xf32>
    %77 = arith.divf %75, %76 : vector<8x1xf32>
    %78 = vector.broadcast %77 : vector<8x1xf32> to vector<8x32xf32>
    %79 = arith.subf %71, %78 : vector<8x32xf32>
    %80 = arith.mulf %79, %79 : vector<8x32xf32>
    %cst_31 = arith.constant dense<0.000000e+00> : vector<8xf32>
    %81 = vector.multi_reduction <add>, %80, %cst_31 [1] : vector<8x32xf32> to vector<8xf32>
    %82 = vector.shape_cast %81 : vector<8xf32> to vector<8x1xf32>
    %cst_32 = arith.constant 3.200000e+01 : f32
    %83 = vector.broadcast %cst_32 : f32 to vector<8x1xf32>
    %84 = arith.divf %82, %83 : vector<8x1xf32>
    %cst_33 = arith.constant 9.99999974E-6 : f32
    %85 = vector.broadcast %cst_33 : f32 to vector<8x1xf32>
    %86 = arith.addf %84, %85 : vector<8x1xf32>
    %87 = math.rsqrt %86 : vector<8x1xf32>
    %88 = vector.broadcast %77 : vector<8x1xf32> to vector<8x32xf32>
    %89 = arith.subf %71, %88 : vector<8x32xf32>
    %90 = vector.broadcast %87 : vector<8x1xf32> to vector<8x32xf32>
    %91 = arith.mulf %89, %90 : vector<8x32xf32>
    %92 = vector.broadcast %72 : vector<1x32xf32> to vector<8x32xf32>
    %93 = arith.mulf %91, %92 : vector<8x32xf32>
    %94 = vector.broadcast %73 : vector<1x32xf32> to vector<8x32xf32>
    %95 = arith.addf %93, %94 : vector<8x32xf32>
    %c0_34 = arith.constant 0 : index
    %c0_35 = arith.constant 0 : index
    %96 = vector.load %arg10[%c0_34, %c0_35] : memref<32x64xf32, #tpu.memory_space<vmem>>, vector<32x64xf32>
    %cst_36 = arith.constant dense<0.000000e+00> : vector<8x64xf32>
    %97 = tpu.matmul %95, %96, %cst_36 {dimension_numbers = #tpu.dot_dimension_numbers<[1], [0], [0], [1], [0, 0, 1, 1], [], []>} : vector<8x32xf32>, vector<32x64xf32>, vector<8x64xf32> -> vector<8x64xf32>
    %c0_37 = arith.constant 0 : index
    %c0_38 = arith.constant 0 : index
    %98 = vector.load %arg11[%c0_37, %c0_38] : memref<1x64xf32, #tpu.memory_space<vmem>>, vector<1x64xf32>
    %99 = vector.broadcast %98 : vector<1x64xf32> to vector<8x64xf32>
    %100 = arith.addf %97, %99 : vector<8x64xf32>
    %cst_39 = arith.constant 5.000000e-01 : f32
    %101 = vector.broadcast %cst_39 : f32 to vector<8x64xf32>
    %102 = arith.mulf %101, %100 : vector<8x64xf32>
    %cst_40 = arith.constant 0.707106769 : f32
    %103 = vector.broadcast %cst_40 : f32 to vector<8x64xf32>
    %104 = arith.mulf %100, %103 : vector<8x64xf32>
    %105 = math.erf %104 : vector<8x64xf32>
    %cst_41 = arith.constant 1.000000e+00 : f32
    %106 = vector.broadcast %cst_41 : f32 to vector<8x64xf32>
    %107 = arith.addf %106, %105 : vector<8x64xf32>
    %108 = arith.mulf %102, %107 : vector<8x64xf32>
    %c0_42 = arith.constant 0 : index
    %c0_43 = arith.constant 0 : index
    %109 = vector.load %arg12[%c0_42, %c0_43] : memref<64x32xf32, #tpu.memory_space<vmem>>, vector<64x32xf32>
    %cst_44 = arith.constant dense<0.000000e+00> : vector<8x32xf32>
    %110 = tpu.matmul %108, %109, %cst_44 {dimension_numbers = #tpu.dot_dimension_numbers<[1], [0], [0], [1], [0, 0, 1, 1], [], []>} : vector<8x64xf32>, vector<64x32xf32>, vector<8x32xf32> -> vector<8x32xf32>
    %c0_45 = arith.constant 0 : index
    %c0_46 = arith.constant 0 : index
    %111 = vector.load %arg13[%c0_45, %c0_46] : memref<1x32xf32, #tpu.memory_space<vmem>>, vector<1x32xf32>
    %112 = vector.broadcast %111 : vector<1x32xf32> to vector<8x32xf32>
    %113 = arith.addf %110, %112 : vector<8x32xf32>
    %114 = arith.addf %71, %113 : vector<8x32xf32>
    %115 = vector.shape_cast %114 : vector<8x32xf32> to vector<1x8x32xf32>
    %c0_47 = arith.constant 0 : index
    %c0_48 = arith.constant 0 : index
    %c0_49 = arith.constant 0 : index
    %116 = vector.load %arg14[%c0_47, %c0_48, %c0_49] : memref<1x8x32xf32, #tpu.memory_space<vmem>>, vector<1x8x32xf32>
    tpu.vector_store %arg14[%c0_47, %c0_48, %c0_49], %115 {strides = array<i32>} : memref<1x8x32xf32, #tpu.memory_space<vmem>>, vector<1x8x32xf32>,
    return
  }
  func.func @transform_0(%arg0: i32) -> (i32, i32, i32) {
    %c0_i32 = arith.constant 0 : i32
    %c0_i32_0 = arith.constant 0 : i32
    %c0_i32_1 = arith.constant 0 : i32
    return %arg0, %c0_i32, %c0_i32_0 : i32, i32, i32
  }
  func.func @transform_1(%arg0: i32) -> (i32, i32) {
    %c0_i32 = arith.constant 0 : i32
    %c0_i32_0 = arith.constant 0 : i32
    %c0_i32_1 = arith.constant 0 : i32
    return %c0_i32, %c0_i32_0 : i32, i32
  }
  func.func @transform_2(%arg0: i32) -> (i32, i32) {
    %c0_i32 = arith.constant 0 : i32
    %c0_i32_0 = arith.constant 0 : i32
    %c0_i32_1 = arith.constant 0 : i32
    return %c0_i32, %c0_i32_0 : i32, i32
  }
  func.func @transform_3(%arg0: i32) -> (i32, i32) {
    %c0_i32 = arith.constant 0 : i32
    %c0_i32_0 = arith.constant 0 : i32
    %c0_i32_1 = arith.constant 0 : i32
    return %c0_i32, %c0_i32_0 : i32, i32
  }
  func.func @transform_4(%arg0: i32) -> (i32, i32) {
    %c0_i32 = arith.constant 0 : i32
    %c0_i32_0 = arith.constant 0 : i32
    %c0_i32_1 = arith.constant 0 : i32
    return %c0_i32, %c0_i32_0 : i32, i32
  }
  func.func @transform_5(%arg0: i32) -> (i32, i32) {
    %c0_i32 = arith.constant 0 : i32
    %c0_i32_0 = arith.constant 0 : i32
    %c0_i32_1 = arith.constant 0 : i32
    return %c0_i32, %c0_i32_0 : i32, i32
  }
  func.func @transform_6(%arg0: i32) -> (i32, i32) {
    %c0_i32 = arith.constant 0 : i32
    %c0_i32_0 = arith.constant 0 : i32
    %c0_i32_1 = arith.constant 0 : i32
    return %c0_i32, %c0_i32_0 : i32, i32
  }
  func.func @transform_7(%arg0: i32) -> (i32, i32) {
    %c0_i32 = arith.constant 0 : i32
    %c0_i32_0 = arith.constant 0 : i32
    %c0_i32_1 = arith.constant 0 : i32
    return %c0_i32, %c0_i32_0 : i32, i32
  }
  func.func @transform_8(%arg0: i32) -> (i32, i32) {
    %c0_i32 = arith.constant 0 : i32
    %c0_i32_0 = arith.constant 0 : i32
    %c0_i32_1 = arith.constant 0 : i32
    return %c0_i32, %c0_i32_0 : i32, i32
  }
  func.func @transform_9(%arg0: i32) -> (i32, i32) {
    %c0_i32 = arith.constant 0 : i32
    %c0_i32_0 = arith.constant 0 : i32
    %c0_i32_1 = arith.constant 0 : i32
    return %c0_i32, %c0_i32_0 : i32, i32
  }
  func.func @transform_10(%arg0: i32) -> (i32, i32) {
    %c0_i32 = arith.constant 0 : i32
    %c0_i32_0 = arith.constant 0 : i32
    %c0_i32_1 = arith.constant 0 : i32
    return %c0_i32, %c0_i32_0 : i32, i32
  }
  func.func @transform_11(%arg0: i32) -> (i32, i32) {
    %c0_i32 = arith.constant 0 : i32
    %c0_i32_0 = arith.constant 0 : i32
    %c0_i32_1 = arith.constant 0 : i32
    return %c0_i32, %c0_i32_0 : i32, i32
  }
  func.func @transform_12(%arg0: i32) -> (i32, i32) {
    %c0_i32 = arith.constant 0 : i32
    %c0_i32_0 = arith.constant 0 : i32
    %c0_i32_1 = arith.constant 0 : i32
    return %c0_i32, %c0_i32_0 : i32, i32
  }
  func.func @transform_13(%arg0: i32) -> (i32, i32, i32) {
    %c0_i32 = arith.constant 0 : i32
    %c0_i32_0 = arith.constant 0 : i32
    %c0_i32_1 = arith.constant 0 : i32
    return %arg0, %c0_i32, %c0_i32_0 : i32, i32, i32
  }
}

module attributes {stable_mosaic.version = 11 : i64} {
  func.func @encoder_layer_kernel(%arg0: i32, %arg1: memref<1x8x32xf32, #tpu.memory_space<vmem>>, %arg2: memref<1x32xf32, #tpu.memory_space<vmem>>, %arg3: memref<1x32xf32, #tpu.memory_space<vmem>>, %arg4: memref<32x1536xf32, #tpu.memory_space<vmem>>, %arg5: memref<1x1536xf32, #tpu.memory_space<vmem>>, %arg6: memref<512x32xf32, #tpu.memory_space<vmem>>, %arg7: memref<1x32xf32, #tpu.memory_space<vmem>>, %arg8: memref<1x32xf32, #tpu.memory_space<vmem>>, %arg9: memref<1x32xf32, #tpu.memory_space<vmem>>, %arg10: memref<32x64xf32, #tpu.memory_space<vmem>>, %arg11: memref<1x64xf32, #tpu.memory_space<vmem>>, %arg12: memref<64x32xf32, #tpu.memory_space<vmem>>, %arg13: memref<1x32xf32, #tpu.memory_space<vmem>>, %arg14: memref<1x8x32xf32, #tpu.memory_space<vmem>>) attributes {dimension_semantics = [#tpu.dimension_semantics<parallel>], iteration_bounds = array<i64: 2>, scalar_prefetch = 0 : i64, scratch_operands = 0 : i64, tpu.core_type = #tpu.core_type<tc>, window_params = [{transform_indices = @transform_0, window_bounds = array<i64: 1, 8, 32>}, {pipeline_mode = #tpu.pipeline_mode<synchronous>, transform_indices = @transform_1, window_bounds = array<i64: 1, 32>}, {pipeline_mode = #tpu.pipeline_mode<synchronous>, transform_indices = @transform_2, window_bounds = array<i64: 1, 32>}, {pipeline_mode = #tpu.pipeline_mode<synchronous>, transform_indices = @transform_3, window_bounds = array<i64: 32, 1536>}, {pipeline_mode = #tpu.pipeline_mode<synchronous>, transform_indices = @transform_4, window_bounds = array<i64: 1, 1536>}, {pipeline_mode = #tpu.pipeline_mode<synchronous>, transform_indices = @transform_5, window_bounds = array<i64: 512, 32>}, {pipeline_mode = #tpu.pipeline_mode<synchronous>, transform_indices = @transform_6, window_bounds = array<i64: 1, 32>}, {pipeline_mode = #tpu.pipeline_mode<synchronous>, transform_indices = @transform_7, window_bounds = array<i64: 1, 32>}, {pipeline_mode = #tpu.pipeline_mode<synchronous>, transform_indices = @transform_8, window_bounds = array<i64: 1, 32>}, {pipeline_mode = #tpu.pipeline_mode<synchronous>, transform_indices = @transform_9, window_bounds = array<i64: 32, 64>}, {pipeline_mode = #tpu.pipeline_mode<synchronous>, transform_indices = @transform_10, window_bounds = array<i64: 1, 64>}, {pipeline_mode = #tpu.pipeline_mode<synchronous>, transform_indices = @transform_11, window_bounds = array<i64: 64, 32>}, {pipeline_mode = #tpu.pipeline_mode<synchronous>, transform_indices = @transform_12, window_bounds = array<i64: 1, 32>}, {transform_indices = @transform_13, window_bounds = array<i64: 1, 8, 32>}]} {
    %c0 = arith.constant 0 : index
    %c0_0 = arith.constant 0 : index
    %c0_1 = arith.constant 0 : index
    %0 = vector.load %arg1[%c0, %c0_0, %c0_1] : memref<1x8x32xf32, #tpu.memory_space<vmem>>, vector<1x8x32xf32>
    %1 = vector.shape_cast %0 : vector<1x8x32xf32> to vector<8x32xf32>
    %c0_2 = arith.constant 0 : index
    %c0_3 = arith.constant 0 : index
    %2 = vector.load %arg2[%c0_2, %c0_3] : memref<1x32xf32, #tpu.memory_space<vmem>>, vector<1x32xf32>
    %c0_4 = arith.constant 0 : index
    %c0_5 = arith.constant 0 : index
    %3 = vector.load %arg3[%c0_4, %c0_5] : memref<1x32xf32, #tpu.memory_space<vmem>>, vector<1x32xf32>
    %cst = arith.constant dense<0.000000e+00> : vector<8xf32>
    %4 = vector.multi_reduction <add>, %1, %cst [1] : vector<8x32xf32> to vector<8xf32>
    %5 = vector.shape_cast %4 : vector<8xf32> to vector<8x1xf32>
    %cst_6 = arith.constant 3.200000e+01 : f32
    %6 = vector.broadcast %cst_6 : f32 to vector<8x1xf32>
    %7 = arith.divf %5, %6 : vector<8x1xf32>
    %8 = vector.broadcast %7 : vector<8x1xf32> to vector<8x32xf32>
    %9 = arith.subf %1, %8 : vector<8x32xf32>
    %10 = arith.mulf %9, %9 : vector<8x32xf32>
    %cst_7 = arith.constant dense<0.000000e+00> : vector<8xf32>
    %11 = vector.multi_reduction <add>, %10, %cst_7 [1] : vector<8x32xf32> to vector<8xf32>
    %12 = vector.shape_cast %11 : vector<8xf32> to vector<8x1xf32>
    %cst_8 = arith.constant 3.200000e+01 : f32
    %13 = vector.broadcast %cst_8 : f32 to vector<8x1xf32>
    %14 = arith.divf %12, %13 : vector<8x1xf32>
    %cst_9 = arith.constant 9.99999974E-6 : f32
    %15 = vector.broadcast %cst_9 : f32 to vector<8x1xf32>
    %16 = arith.addf %14, %15 : vector<8x1xf32>
    %17 = math.rsqrt %16 : vector<8x1xf32>
    %18 = vector.broadcast %7 : vector<8x1xf32> to vector<8x32xf32>
    %19 = arith.subf %1, %18 : vector<8x32xf32>
    %20 = vector.broadcast %17 : vector<8x1xf32> to vector<8x32xf32>
    %21 = arith.mulf %19, %20 : vector<8x32xf32>
    %22 = vector.broadcast %2 : vector<1x32xf32> to vector<8x32xf32>
    %23 = arith.mulf %21, %22 : vector<8x32xf32>
    %24 = vector.broadcast %3 : vector<1x32xf32> to vector<8x32xf32>
    %25 = arith.addf %23, %24 : vector<8x32xf32>
    %c0_10 = arith.constant 0 : index
    %c0_11 = arith.constant 0 : index
    %26 = vector.load %arg4[%c0_10, %c0_11] : memref<32x1536xf32, #tpu.memory_space<vmem>>, vector<32x1536xf32>
    %cst_12 = arith.constant dense<0.000000e+00> : vector<8x1536xf32>
    %27 = tpu.matmul %25, %26, %cst_12 {dimension_numbers = #tpu.dot_dimension_numbers<[1], [0], [0], [1], [0, 0, 1, 1], [], []>} : vector<8x32xf32>, vector<32x1536xf32>, vector<8x1536xf32> -> vector<8x1536xf32>
    %c0_13 = arith.constant 0 : index
    %c0_14 = arith.constant 0 : index
    %28 = vector.load %arg5[%c0_13, %c0_14] : memref<1x1536xf32, #tpu.memory_space<vmem>>, vector<1x1536xf32>
    %29 = vector.broadcast %28 : vector<1x1536xf32> to vector<8x1536xf32>
    %30 = arith.addf %27, %29 : vector<8x1536xf32>
    %31 = vector.shape_cast %30 : vector<8x1536xf32> to vector<1x8x1536xf32>
    %32 = vector.extract_strided_slice %31 {offsets = [0, 0, 0], sizes = [1, 8, 128], strides = [1, 1, 1]} : vector<1x8x1536xf32> to vector<1x8x128xf32>
    %33 = vector.extract_strided_slice %31 {offsets = [0, 0, 128], sizes = [1, 8, 128], strides = [1, 1, 1]} : vector<1x8x1536xf32> to vector<1x8x128xf32>
    %34 = vector.extract_strided_slice %31 {offsets = [0, 0, 256], sizes = [1, 8, 128], strides = [1, 1, 1]} : vector<1x8x1536xf32> to vector<1x8x128xf32>
    %35 = vector.extract_strided_slice %31 {offsets = [0, 0, 384], sizes = [1, 8, 128], strides = [1, 1, 1]} : vector<1x8x1536xf32> to vector<1x8x128xf32>
    %36 = tpu.concatenate %32, %33, %34, %35 in 0 : vector<1x8x128xf32>, vector<1x8x128xf32>, vector<1x8x128xf32>, vector<1x8x128xf32> -> vector<4x8x128xf32>
    %37 = vector.extract_strided_slice %31 {offsets = [0, 0, 512], sizes = [1, 8, 128], strides = [1, 1, 1]} : vector<1x8x1536xf32> to vector<1x8x128xf32>
    %38 = vector.extract_strided_slice %31 {offsets = [0, 0, 640], sizes = [1, 8, 128], strides = [1, 1, 1]} : vector<1x8x1536xf32> to vector<1x8x128xf32>
    %39 = vector.extract_strided_slice %31 {offsets = [0, 0, 768], sizes = [1, 8, 128], strides = [1, 1, 1]} : vector<1x8x1536xf32> to vector<1x8x128xf32>
    %40 = vector.extract_strided_slice %31 {offsets = [0, 0, 896], sizes = [1, 8, 128], strides = [1, 1, 1]} : vector<1x8x1536xf32> to vector<1x8x128xf32>
    %41 = tpu.concatenate %37, %38, %39, %40 in 0 : vector<1x8x128xf32>, vector<1x8x128xf32>, vector<1x8x128xf32>, vector<1x8x128xf32> -> vector<4x8x128xf32>
    %42 = vector.extract_strided_slice %31 {offsets = [0, 0, 1024], sizes = [1, 8, 128], strides = [1, 1, 1]} : vector<1x8x1536xf32> to vector<1x8x128xf32>
    %43 = vector.extract_strided_slice %31 {offsets = [0, 0, 1152], sizes = [1, 8, 128], strides = [1, 1, 1]} : vector<1x8x1536xf32> to vector<1x8x128xf32>
    %44 = vector.extract_strided_slice %31 {offsets = [0, 0, 1280], sizes = [1, 8, 128], strides = [1, 1, 1]} : vector<1x8x1536xf32> to vector<1x8x128xf32>
    %45 = vector.extract_strided_slice %31 {offsets = [0, 0, 1408], sizes = [1, 8, 128], strides = [1, 1, 1]} : vector<1x8x1536xf32> to vector<1x8x128xf32>
    %46 = tpu.concatenate %42, %43, %44, %45 in 0 : vector<1x8x128xf32>, vector<1x8x128xf32>, vector<1x8x128xf32>, vector<1x8x128xf32> -> vector<4x8x128xf32>
    "tpu.trace_start"() <{level = 10 : i32, message = "bsd,btd->bst"}> : () -> ()
    %cst_15 = arith.constant dense<0.000000e+00> : vector<4x8x8xf32>
    %47 = tpu.matmul %36, %41, %cst_15 {dimension_numbers = #tpu.dot_dimension_numbers<[2], [2], [1], [1], [0, 0, 0, 1, 1, 1], [0], [0]>} : vector<4x8x128xf32>, vector<4x8x128xf32>, vector<4x8x8xf32> -> vector<4x8x8xf32>
    "tpu.trace_stop"() : () -> ()
    %cst_16 = arith.constant dense<0xFF800000> : vector<4x8xf32>
    %48 = vector.multi_reduction <maximumf>, %47, %cst_16 [2] : vector<4x8x8xf32> to vector<4x8xf32>
    %49 = vector.shape_cast %48 : vector<4x8xf32> to vector<4x8x1xf32>
    %50 = vector.broadcast %49 : vector<4x8x1xf32> to vector<4x8x8xf32>
    %51 = arith.subf %47, %50 : vector<4x8x8xf32>
    %52 = math.exp %51 : vector<4x8x8xf32>
    %cst_17 = arith.constant dense<0.000000e+00> : vector<4x8xf32>
    %53 = vector.multi_reduction <add>, %52, %cst_17 [2] : vector<4x8x8xf32> to vector<4x8xf32>
    %54 = vector.shape_cast %53 : vector<4x8xf32> to vector<4x8x1xf32>
    %cst_18 = arith.constant 1.000000e+00 : f32
    %55 = vector.broadcast %cst_18 : f32 to vector<4x8x1xf32>
    %56 = arith.divf %55, %54 : vector<4x8x1xf32>
    %57 = vector.broadcast %56 : vector<4x8x1xf32> to vector<4x8x8xf32>
    %58 = arith.mulf %52, %57 : vector<4x8x8xf32>
    "tpu.trace_start"() <{level = 10 : i32, message = "bst,btd->bsd"}> : () -> ()
    %cst_19 = arith.constant dense<0.000000e+00> : vector<4x8x128xf32>
    %59 = tpu.matmul %58, %46, %cst_19 {dimension_numbers = #tpu.dot_dimension_numbers<[2], [1], [1], [2], [0, 0, 0, 1, 1, 2], [0], [0]>} : vector<4x8x8xf32>, vector<4x8x128xf32>, vector<4x8x128xf32> -> vector<4x8x128xf32>
    "tpu.trace_stop"() : () -> ()
    %60 = vector.extract_strided_slice %59 {offsets = [0, 0, 0], sizes = [1, 8, 128], strides = [1, 1, 1]} : vector<4x8x128xf32> to vector<1x8x128xf32>
    %61 = vector.extract_strided_slice %59 {offsets = [1, 0, 0], sizes = [1, 8, 128], strides = [1, 1, 1]} : vector<4x8x128xf32> to vector<1x8x128xf32>
    %62 = vector.extract_strided_slice %59 {offsets = [2, 0, 0], sizes = [1, 8, 128], strides = [1, 1, 1]} : vector<4x8x128xf32> to vector<1x8x128xf32>
    %63 = vector.extract_strided_slice %59 {offsets = [3, 0, 0], sizes = [1, 8, 128], strides = [1, 1, 1]} : vector<4x8x128xf32> to vector<1x8x128xf32>
    %64 = tpu.concatenate %60, %61, %62, %63 in 2 : vector<1x8x128xf32>, vector<1x8x128xf32>, vector<1x8x128xf32>, vector<1x8x128xf32> -> vector<1x8x512xf32>
    %65 = vector.shape_cast %64 : vector<1x8x512xf32> to vector<8x512xf32>
    %c0_20 = arith.constant 0 : index
    %c0_21 = arith.constant 0 : index
    %66 = vector.load %arg6[%c0_20, %c0_21] : memref<512x32xf32, #tpu.memory_space<vmem>>, vector<512x32xf32>
    %cst_22 = arith.constant dense<0.000000e+00> : vector<8x32xf32>
    %67 = tpu.matmul %65, %66, %cst_22 {dimension_numbers = #tpu.dot_dimension_numbers<[1], [0], [0], [1], [0, 0, 1, 1], [], []>} : vector<8x512xf32>, vector<512x32xf32>, vector<8x32xf32> -> vector<8x32xf32>
    %c0_23 = arith.constant 0 : index
    %c0_24 = arith.constant 0 : index
    %68 = vector.load %arg7[%c0_23, %c0_24] : memref<1x32xf32, #tpu.memory_space<vmem>>, vector<1x32xf32>
    %69 = vector.broadcast %68 : vector<1x32xf32> to vector<8x32xf32>
    %70 = arith.addf %67, %69 : vector<8x32xf32>
    %71 = arith.addf %1, %70 : vector<8x32xf32>
    %c0_25 = arith.constant 0 : index
    %c0_26 = arith.constant 0 : index
    %72 = vector.load %arg8[%c0_25, %c0_26] : memref<1x32xf32, #tpu.memory_space<vmem>>, vector<1x32xf32>
    %c0_27 = arith.constant 0 : index
    %c0_28 = arith.constant 0 : index
    %73 = vector.load %arg9[%c0_27, %c0_28] : memref<1x32xf32, #tpu.memory_space<vmem>>, vector<1x32xf32>
    %cst_29 = arith.constant dense<0.000000e+00> : vector<8xf32>
    %74 = vector.multi_reduction <add>, %71, %cst_29 [1] : vector<8x32xf32> to vector<8xf32>
    %75 = vector.shape_cast %74 : vector<8xf32> to vector<8x1xf32>
    %cst_30 = arith.constant 3.200000e+01 : f32
    %76 = vector.broadcast %cst_30 : f32 to vector<8x1xf32>
    %77 = arith.divf %75, %76 : vector<8x1xf32>
    %78 = vector.broadcast %77 : vector<8x1xf32> to vector<8x32xf32>
    %79 = arith.subf %71, %78 : vector<8x32xf32>
    %80 = arith.mulf %79, %79 : vector<8x32xf32>
    %cst_31 = arith.constant dense<0.000000e+00> : vector<8xf32>
    %81 = vector.multi_reduction <add>, %80, %cst_31 [1] : vector<8x32xf32> to vector<8xf32>
    %82 = vector.shape_cast %81 : vector<8xf32> to vector<8x1xf32>
    %cst_32 = arith.constant 3.200000e+01 : f32
    %83 = vector.broadcast %cst_32 : f32 to vector<8x1xf32>
    %84 = arith.divf %82, %83 : vector<8x1xf32>
    %cst_33 = arith.constant 9.99999974E-6 : f32
    %85 = vector.broadcast %cst_33 : f32 to vector<8x1xf32>
    %86 = arith.addf %84, %85 : vector<8x1xf32>
    %87 = math.rsqrt %86 : vector<8x1xf32>
    %88 = vector.broadcast %77 : vector<8x1xf32> to vector<8x32xf32>
    %89 = arith.subf %71, %88 : vector<8x32xf32>
    %90 = vector.broadcast %87 : vector<8x1xf32> to vector<8x32xf32>
    %91 = arith.mulf %89, %90 : vector<8x32xf32>
    %92 = vector.broadcast %72 : vector<1x32xf32> to vector<8x32xf32>
    %93 = arith.mulf %91, %92 : vector<8x32xf32>
    %94 = vector.broadcast %73 : vector<1x32xf32> to vector<8x32xf32>
    %95 = arith.addf %93, %94 : vector<8x32xf32>
    %c0_34 = arith.constant 0 : index
    %c0_35 = arith.constant 0 : index
    %96 = vector.load %arg10[%c0_34, %c0_35] : memref<32x64xf32, #tpu.memory_space<vmem>>, vector<32x64xf32>
    %cst_36 = arith.constant dense<0.000000e+00> : vector<8x64xf32>
    %97 = tpu.matmul %95, %96, %cst_36 {dimension_numbers = #tpu.dot_dimension_numbers<[1], [0], [0], [1], [0, 0, 1, 1], [], []>} : vector<8x32xf32>, vector<32x64xf32>, vector<8x64xf32> -> vector<8x64xf32>
    %c0_37 = arith.constant 0 : index
    %c0_38 = arith.constant 0 : index
    %98 = vector.load %arg11[%c0_37, %c0_38] : memref<1x64xf32, #tpu.memory_space<vmem>>, vector<1x64xf32>
    %99 = vector.broadcast %98 : vector<1x64xf32> to vector<8x64xf32>
    %100 = arith.addf %97, %99 : vector<8x64xf32>
    %cst_39 = arith.constant 5.000000e-01 : f32
    %101 = vector.broadcast %cst_39 : f32 to vector<8x64xf32>
    %102 = arith.mulf %101, %100 : vector<8x64xf32>
    %cst_40 = arith.constant 0.707106769 : f32
    %103 = vector.broadcast %cst_40 : f32 to vector<8x64xf32>
    %104 = arith.mulf %100, %103 : vector<8x64xf32>
    %105 = math.erf %104 : vector<8x64xf32>
    %cst_41 = arith.constant 1.000000e+00 : f32
    %106 = vector.broadcast %cst_41 : f32 to vector<8x64xf32>
    %107 = arith.addf %106, %105 : vector<8x64xf32>
    %108 = arith.mulf %102, %107 : vector<8x64xf32>
    %c0_42 = arith.constant 0 : index
    %c0_43 = arith.constant 0 : index
    %109 = vector.load %arg12[%c0_42, %c0_43] : memref<64x32xf32, #tpu.memory_space<vmem>>, vector<64x32xf32>
    %cst_44 = arith.constant dense<0.000000e+00> : vector<8x32xf32>
    %110 = tpu.matmul %108, %109, %cst_44 {dimension_numbers = #tpu.dot_dimension_numbers<[1], [0], [0], [1], [0, 0, 1, 1], [], []>} : vector<8x64xf32>, vector<64x32xf32>, vector<8x32xf32> -> vector<8x32xf32>
    %c0_45 = arith.constant 0 : index
    %c0_46 = arith.constant 0 : index
    %111 = vector.load %arg13[%c0_45, %c0_46] : memref<1x32xf32, #tpu.memory_space<vmem>>, vector<1x32xf32>
    %112 = vector.broadcast %111 : vector<1x32xf32> to vector<8x32xf32>
    %113 = arith.addf %110, %112 : vector<8x32xf32>
    %114 = arith.addf %71, %113 : vector<8x32xf32>
    %115 = vector.shape_cast %114 : vector<8x32xf32> to vector<1x8x32xf32>
    %c0_47 = arith.constant 0 : index
    %c0_48 = arith.constant 0 : index
    %c0_49 = arith.constant 0 : index
    %116 = vector.load %arg14[%c0_47, %c0_48, %c0_49] : memref<1x8x32xf32, #tpu.memory_space<vmem>>, vector<1x8x32xf32>
    tpu.vector_store %arg14[%c0_47, %c0_48, %c0_49], %115 {strides = array<i32>} : memref<1x8x32xf32, #tpu.memory_space<vmem>>, vector<1x8x32xf32>,
    return
  }
  func.func @transform_0(%arg0: i32) -> (i32, i32, i32) {
    %c0_i32 = arith.constant 0 : i32
    %c0_i32_0 = arith.constant 0 : i32
    %c0_i32_1 = arith.constant 0 : i32
    return %arg0, %c0_i32, %c0_i32_0 : i32, i32, i32
  }
  func.func @transform_1(%arg0: i32) -> (i32, i32) {
    %c0_i32 = arith.constant 0 : i32
    %c0_i32_0 = arith.constant 0 : i32
    %c0_i32_1 = arith.constant 0 : i32
    return %c0_i32, %c0_i32_0 : i32, i32
  }
  func.func @transform_2(%arg0: i32) -> (i32, i32) {
    %c0_i32 = arith.constant 0 : i32
    %c0_i32_0 = arith.constant 0 : i32
    %c0_i32_1 = arith.constant 0 : i32
    return %c0_i32, %c0_i32_0 : i32, i32
  }
  func.func @transform_3(%arg0: i32) -> (i32, i32) {
    %c0_i32 = arith.constant 0 : i32
    %c0_i32_0 = arith.constant 0 : i32
    %c0_i32_1 = arith.constant 0 : i32
    return %c0_i32, %c0_i32_0 : i32, i32
  }
  func.func @transform_4(%arg0: i32) -> (i32, i32) {
    %c0_i32 = arith.constant 0 : i32
    %c0_i32_0 = arith.constant 0 : i32
    %c0_i32_1 = arith.constant 0 : i32
    return %c0_i32, %c0_i32_0 : i32, i32
  }
  func.func @transform_5(%arg0: i32) -> (i32, i32) {
    %c0_i32 = arith.constant 0 : i32
    %c0_i32_0 = arith.constant 0 : i32
    %c0_i32_1 = arith.constant 0 : i32
    return %c0_i32, %c0_i32_0 : i32, i32
  }
  func.func @transform_6(%arg0: i32) -> (i32, i32) {
    %c0_i32 = arith.constant 0 : i32
    %c0_i32_0 = arith.constant 0 : i32
    %c0_i32_1 = arith.constant 0 : i32
    return %c0_i32, %c0_i32_0 : i32, i32
  }
  func.func @transform_7(%arg0: i32) -> (i32, i32) {
    %c0_i32 = arith.constant 0 : i32
    %c0_i32_0 = arith.constant 0 : i32
    %c0_i32_1 = arith.constant 0 : i32
    return %c0_i32, %c0_i32_0 : i32, i32
  }
  func.func @transform_8(%arg0: i32) -> (i32, i32) {
    %c0_i32 = arith.constant 0 : i32
    %c0_i32_0 = arith.constant 0 : i32
    %c0_i32_1 = arith.constant 0 : i32
    return %c0_i32, %c0_i32_0 : i32, i32
  }
  func.func @transform_9(%arg0: i32) -> (i32, i32) {
    %c0_i32 = arith.constant 0 : i32
    %c0_i32_0 = arith.constant 0 : i32
    %c0_i32_1 = arith.constant 0 : i32
    return %c0_i32, %c0_i32_0 : i32, i32
  }
  func.func @transform_10(%arg0: i32) -> (i32, i32) {
    %c0_i32 = arith.constant 0 : i32
    %c0_i32_0 = arith.constant 0 : i32
    %c0_i32_1 = arith.constant 0 : i32
    return %c0_i32, %c0_i32_0 : i32, i32
  }
  func.func @transform_11(%arg0: i32) -> (i32, i32) {
    %c0_i32 = arith.constant 0 : i32
    %c0_i32_0 = arith.constant 0 : i32
    %c0_i32_1 = arith.constant 0 : i32
    return %c0_i32, %c0_i32_0 : i32, i32
  }
  func.func @transform_12(%arg0: i32) -> (i32, i32) {
    %c0_i32 = arith.constant 0 : i32
    %c0_i32_0 = arith.constant 0 : i32
    %c0_i32_1 = arith.constant 0 : i32
    return %c0_i32, %c0_i32_0 : i32, i32
  }
  func.func @transform_13(%arg0: i32) -> (i32, i32, i32) {
    %c0_i32 = arith.constant 0 : i32
    %c0_i32_0 = arith.constant 0 : i32
    %c0_i32_1 = arith.constant 0 : i32
    return %arg0, %c0_i32, %c0_i32_0 : i32, i32, i32
  }
}

</mosaic_0001>

<bundles_post_ra>
// kernel: tpu_custom_call.1
= control target key start
LH: loop header
LB: loop body
LE: loop exit
PB: predicated region body
PF: predicated region fallthrough
CT: control target
= control target key end

     0   :  { %s3228_s0 = inlined_call_operand.vmem [shape: f32[2,8,32], index: 0, kind: input, shape index: {}]   ;;  %s3229_s1 = inlined_call_operand.vmem [shape: f32[1,32], index: 1, kind: input, shape index: {}]   ;;  %s3230_s2 = inlined_call_operand.vmem [shape: f32[1,32], index: 2, kind: input, shape index: {}]   ;;  %s3231_s3 = inlined_call_operand.vmem [shape: f32[32,1536], index: 3, kind: input, shape index: {}]   ;;  %s3232_s4 = inlined_call_operand.vmem [shape: f32[1,1536], index: 4, kind: input, shape index: {}]   ;;  %s3233_s5 = inlined_call_operand.vmem [shape: f32[512,32], index: 5, kind: input, shape index: {}]   ;;  %s3234_s6 = inlined_call_operand.vmem [shape: f32[1,32], index: 6, kind: input, shape index: {}]   ;;  %s3235_s7 = inlined_call_operand.vmem [shape: f32[1,32], index: 7, kind: input, shape index: {}]   ;;  %s3236_s8 = inlined_call_operand.vmem [shape: f32[1,32], index: 8, kind: input, shape index: {}]   ;;  %s3237_s9 = inlined_call_operand.vmem [shape: f32[32,64], index: 9, kind: input, shape index: {}]   ;;  %s3238_s10 = inlined_call_operand.vmem [shape: f32[1,64], index: 10, kind: input, shape index: {}]   ;;  %s3239_s11 = inlined_call_operand.vmem [shape: f32[64,32], index: 11, kind: input, shape index: {}]   ;;  %s3240_s12 = inlined_call_operand.vmem [shape: f32[1,32], index: 12, kind: input, shape index: {}]   ;;  %s3241_s13 = inlined_call_operand.hbm [shape: f32[2,8,32], index: 13, kind: output, shape index: {}]  }
   0x1   :  { %3243 = sst [smem:[#allocation7_spill]] %s3228_s0 }
   0x2   :  { %3244 = sst [smem:[#allocation8_spill]] %s3229_s1 }
   0x3   :  { %18 = vsyncpa [#allocation3], 0 }
   0x4   :  { %20 = vsyncpa [#allocation3 + $0x1], 0  ;;  %s2655_s25 = smov 0   ;;  %s2657_s26 = smov 0  }
   0x5   :  { %s2659_s27 = smov 0   ;;  %s2661_s28 = smov 0  }
   0x6 LB: > { %3245 = sst [smem:[#allocation5_spill]] %s2575_s27  ;;  %s2676_s29 = sadd.s32 4294967295, %s2579_s28   ;;  %s2579_s28 = sphi %s2661_s28, %s3255_s28   ;;  %s2575_s27 = sphi %s2659_s27, %s3252_s27   ;;  %s2571_s26 = sphi %s2657_s26, %s3254_s26   ;;  %s2567_s25 = sphi %s2655_s25, %s3253_s25  }
   0x7   : > { %s2124_s30 = sadd.s32 4294967294, %s2579_s28   ;;  %s2680_s14 = sadd.s32 1, %s2579_s28  }
   0x8   : > { %s311_s15 = sadd.s32 1, %s2575_s27  ;;  %s308_s16 = ssub.s32 %s2579_s28, %s2680_s14 }
   0x9   : > { %p321_p0 = scmp.ne.s32.totalorder %s2575_s27, %s2571_s26  ;;  %p309_p1 = scmp.eq.s32.totalorder %s308_s16, 0 }
   0xa   : > { %p322_p2 = scmp.eq.s32.totalorder %s2676_s29, 1  ;;  %p327_p3 = scmp.ne.s32.totalorder %s2571_s26, %s2567_s25 }
   0xb   : > { %p328_p4 = scmp.eq.s32.totalorder %s2124_s30, 1  ;;  %p2127_p7 = scmp.ge.s32.totalorder %s2579_s28, 1 }
   0xc   : > { %s2691_s17 = scalar_select %p309_p1, %s2575_s27, %s311_s15  }
   0xd   : > { %p2693_p5 = por %p322_p2, %p321_p0  ;;  %p2697_p6 = por %p328_p4, %p327_p3 }
   0xe   : > { %3246 = sst [smem:[#allocation6_spill]] %s2691_s17  ;;  %p389_p8 = scmp.lt.s32.totalorder %s2579_s28, 3 }
  0x10   : > { %p390_p9 = pnand %p2127_p7, %p389_p8 }
  0x11   : > { %p432_p10 = scmp.lt.s32.totalorder (!%p390_p9), %s2676_s29, 1  ;;  %vm439_vm0 = vcmask (!%p390_p9), 261120   ;;  %s3249_s0 = sld [smem:[#allocation7_spill]] (!%p390_p9)  ;;  %v469_v7 = vld [vmem:[%s3231_s3 + $0x8] sm:$0xff] (!%p390_p9)  ;;  %v471_v9 = vld [vmem:[%s3231_s3 + $0x18] sm:$0xff] (!%p390_p9)  ;;  %v468_v12 = vld [vmem:[%s3231_s3] sm:$0xff] (!%p390_p9) }
  0x12   : > { %393 = sbr.rel (%p390_p9) target bundleno = 2312 (0x908), region = 72  ;;  %v481_v8 = vld [vmem:[%s3231_s3 + $0x68] sm:$0xff] (!%p390_p9)  ;;  %v483_v11 = vld [vmem:[%s3231_s3 + $0x78] sm:$0xff] (!%p390_p9)  ;;  %v480_v13 = vld [vmem:[%s3231_s3 + $0x60] sm:$0xff] (!%p390_p9)  ;;  %v2581_v37 = vmov (!%p390_p9), 0.0   ;;  %s3250_s1 = sld [smem:[#allocation8_spill]] (!%p390_p9) }
  0x13   : > { %v2323_v10 = vpack.c.bf16 (!%p390_p9), %v481_v8, %v469_v7  ;;  %v2331_v14 = vpack.c.bf16 (!%p390_p9), %v483_v11, %v471_v9  ;;  %v2325_v15 = vpack.c.bf16 (!%p390_p9), %v480_v13, %v468_v12  ;;  %v470_v16 = vld [vmem:[%s3231_s3 + $0x10] sm:$0xff] (!%p390_p9)  ;;  %v493_v19 = vld [vmem:[%s3231_s3 + $0xc8] sm:$0xff] (!%p390_p9)  ;;  %v495_v21 = vld [vmem:[%s3231_s3 + $0xd8] sm:$0xff] (!%p390_p9)  ;;  %647 = vmatprep.mubr.f32.mxu0 (!%p390_p9), %v2581_v37  ;;  %718 = vmatprep.mubr.f32.mxu1 (!%p390_p9), %v2581_v37  ;;  %vm2582_vm1 = vmmov (!%p390_p9), 0   ;;  %s2150_s22 = sshll.u32 (!%p390_p9), %s2676_s29, 7 }
  0x14   : > { %v482_v17 = vld [vmem:[%s3231_s3 + $0x70] sm:$0xff] (!%p390_p9)  ;;  %v505_v20 = vld [vmem:[%s3231_s3 + $0x128] sm:$0xff] (!%p390_p9)  ;;  %v507_v23 = vld [vmem:[%s3231_s3 + $0x138] sm:$0xff] (!%p390_p9)  ;;  %vm1289_vm2 = vcmask (!%p390_p9), 64512   ;;  %vm1975_vm3 = vcmask (!%p390_p9), 523264   ;;  %s3185_s15 = scalar_lea.hbm (!%p390_p9), %s3241_s13, %s2150_s22 }
  0x15   : > { %2324 = vmatprep.subr.bf16.mxu0 (!%p390_p9), %v2323_v10  ;;  %v2333_v18 = vpack.c.bf16 (!%p390_p9), %v482_v17, %v470_v16  ;;  %2332 = vmatprep.subr.bf16.mxu1 (!%p390_p9), %v2331_v14  ;;  %v2327_v22 = vpack.c.bf16 (!%p390_p9), %v505_v20, %v493_v19  ;;  %v492_v24 = vld [vmem:[%s3231_s3 + $0xc0] sm:$0xff] (!%p390_p9)  ;;  %v2335_v26 = vpack.c.bf16 (!%p390_p9), %v507_v23, %v495_v21  ;;  %v494_v28 = vld [vmem:[%s3231_s3 + $0xd0] sm:$0xff] (!%p390_p9)  ;;  %v473_v31 = vld [vmem:[%s3231_s3 + $0x28] sm:$0xff] (!%p390_p9) }
  0x16   : > { %2326 = vmatpush1.bf16.msra.mxu0 (!%p390_p9), %v2325_v15  ;;  %v504_v25 = vld [vmem:[%s3231_s3 + $0x120] sm:$0xff] (!%p390_p9)  ;;  %v506_v29 = vld [vmem:[%s3231_s3 + $0x130] sm:$0xff] (!%p390_p9)  ;;  %v485_v32 = vld [vmem:[%s3231_s3 + $0x88] sm:$0xff] (!%p390_p9) }
  0x17   : > { %2334 = vmatpush1.bf16.msra.mxu1 (!%p390_p9), %v2333_v18  ;;  %v2329_v27 = vpack.c.bf16 (!%p390_p9), %v504_v25, %v492_v24  ;;  %2328 = vmatprep.subr.bf16.mxu0 (!%p390_p9), %v2327_v22  ;;  %v2337_v30 = vpack.c.bf16 (!%p390_p9), %v506_v29, %v494_v28  ;;  %v475_v33 = vld [vmem:[%s3231_s3 + $0x38] sm:$0xff] (!%p390_p9)  ;;  %v2339_v34 = vpack.c.bf16 (!%p390_p9), %v485_v32, %v473_v31  ;;  %v2131_v43 = vld [vmem:[%s3230_s2] ss:$0 sm:$0xff] (!%p390_p9)  ;;  %v474_v47 = vld [vmem:[%s3231_s3 + $0x30] sm:$0xff] (!%p390_p9) }
  0x18   : > { %2336 = vmatprep.subr.bf16.mxu1 (!%p390_p9), %v2335_v26  ;;  %v487_v35 = vld [vmem:[%s3231_s3 + $0x98] sm:$0xff] (!%p390_p9)  ;;  %v2130_v41 = vld [vmem:[%s3250_s1] ss:$0 sm:$0xff] (!%p390_p9)  ;;  %v486_v48 = vld [vmem:[%s3231_s3 + $0x90] sm:$0xff] (!%p390_p9)  ;;  %v520_v26 = vlaneseq (!%p390_p9) }
  0x19   : > { %s433_s20 = scalar_select %p432_p10, %s2676_s29, 1  ;;  %v2347_v36 = vpack.c.bf16 %v487_v35, %v475_v33  ;;  %v472_v44 = vld [vmem:[%s3231_s3 + $0x20] sm:$0xff]  ;;  %v497_v49 = vld [vmem:[%s3231_s3 + $0xe8] sm:$0xff]  ;;  %v499_v51 = vld [vmem:[%s3231_s3 + $0xf8] sm:$0xff]  ;;  %v2349_v55 = vpack.c.bf16 %v486_v48, %v474_v47 }
  0x1a   : > { %2330 = vmatpush1.bf16.msra.mxu0 %v2329_v27  ;;  %v484_v45 = vld [vmem:[%s3231_s3 + $0x80] sm:$0xff]  ;;  %v509_v50 = vld [vmem:[%s3231_s3 + $0x148] sm:$0xff]  ;;  %v511_v52 = vld [vmem:[%s3231_s3 + $0x158] sm:$0xff]  ;;  %v521_v27 = vshrl.u32 %v520_v26, 7 }
  0x1b   : > { %s2129_s21 = sshll.u32 %s433_s20, 3  ;;  %2338 = vmatpush1.bf16.msra.mxu1 %v2337_v30  ;;  %2340 = vmatprep.subr.bf16.mxu0 %v2339_v34  ;;  %v2341_v54 = vpack.c.bf16 %v484_v45, %v472_v44  ;;  %v496_v56 = vld [vmem:[%s3231_s3 + $0xe0] sm:$0xff]  ;;  %v2343_v59 = vpack.c.bf16 %v509_v50, %v497_v49  ;;  %v2351_v60 = vpack.c.bf16 %v511_v52, %v499_v51  ;;  %v498_v61 = vld [vmem:[%s3231_s3 + $0xf0] sm:$0xff]  ;;  %v477_v63 = vld [vmem:[%s3231_s3 + $0x48] sm:$0xff]  ;;  %s2584_s20 = smov [#allocation2]  }
  0x1c   : > { %s435_s24 = scalar_lea.vmem %s3249_s0, %s2129_s21  ;;  %2348 = vmatprep.subr.bf16.mxu1 %v2347_v36  ;;  %v508_v57 = vld [vmem:[%s3231_s3 + $0x140] sm:$0xff]  ;;  %v510_v62 = vld [vmem:[%s3231_s3 + $0x150] sm:$0xff]  ;;  %v501_v12 = vld [vmem:[%s3231_s3 + $0x108] sm:$0xff]  ;;  %v530_v28 = vsub.s32 2, %v521_v27  ;;  %v534_v29 = vsub.s32 3, %v521_v27  ;;  %v546_v51 = vsub.s32 6, %v521_v27 }
  0x1d   : > { %v2708_v0 = vld [vmem:[%s435_s24] sm:$0xff]  ;;  %v478_v10 = vld [vmem:[%s3231_s3 + $0x50] sm:$0xff]  ;;  %v513_v13 = vld [vmem:[%s3231_s3 + $0x168] sm:$0xff]  ;;  %s429_s21 = sand.u32 1, %s2571_s26  }
  0x1e   : > { %v440_v1 = vsel %vm439_vm0, %v2708_v0, 0.0  ;;  %v488_v7 = vld [vmem:[%s3231_s3 + $0xa0] sm:$0xff]  ;;  %v490_v11 = vld [vmem:[%s3231_s3 + $0xb0] sm:$0xff]  ;;  %v503_v14 = vld [vmem:[%s3231_s3 + $0x118] sm:$0xff]  ;;  %v2359_v19 = vpack.c.bf16 %v513_v13, %v501_v12  ;;  %s2128_s0 = sshll.u32 %s429_s21, 3  ;;  %s2052_s16 = scalar_lea.sflag [#allocation3], %s429_s21 }
  0x1f   : > { %441 = vadd.xlane.f32.xlu0 %v440_v1  ;;  %v489_v1 = vld [vmem:[%s3231_s3 + $0xa8] sm:$0xff]  ;;  %v515_v15 = vld [vmem:[%s3231_s3 + $0x178] sm:$0xff]  ;;  %v2365_v17 = vpack.c.bf16 %v490_v11, %v478_v10  ;;  %v500_v18 = vld [vmem:[%s3231_s3 + $0x100] sm:$0xff]  ;;  %s431_s23 = scalar_lea.vmem [#allocation2], %s2128_s0  ;;  %s2521_s0 = sshll.u32 %s2584_s20, 4  ;;  %s2522_s0 = int_to_ptr.vmem [resolvable:$false] %s2521_s0 }
  0x20   : > { %v2355_v8 = vpack.c.bf16 %v489_v1, %v477_v63  ;;  %v2367_v20 = vpack.c.bf16 %v515_v15, %v503_v14  ;;  %v512_v21 = vld [vmem:[%s3231_s3 + $0x160] sm:$0xff]  ;;  %v502_v22 = vld [vmem:[%s3231_s3 + $0x110] sm:$0xff]  ;;  %v517_v30 = vld [vmem:[%s3232_s4 + $0x8] sm:$0xf]  ;;  %s2065_s1 = sshll.u32 %s431_s23, 4  ;;  %s2523_s17 = scalar_lea.vmem %s2522_s0, 256  ;;  %s3187_s1 = int_to_ptr.vmem [resolvable:$true] %s2065_s1 }
  0x21   : > { %v514_v23 = vld [vmem:[%s3231_s3 + $0x170] sm:$0xff]  ;;  %v2361_v24 = vpack.c.bf16 %v512_v21, %v500_v18  ;;  %v563_v31 = vrot.slane %v517_v30, %v530_v28  ;;  %v567_v32 = vrot.slane %v517_v30, %v534_v29  ;;  %s2517_s29 = scalar_lea.vmem %s3187_s1, 128  ;;  %p2524_p0 = scmp.lt.s32.totalorder %s3187_s1, %s2522_s0 }
  0x22   : > { %v2369_v25 = vpack.c.bf16 %v514_v23, %v502_v22  ;;  %p2518_p11 = scmp.ne.s32.totalorder %s3187_s1, %s2517_s29  ;;  %p2525_p1 = scmp.lt.s32.totalorder %s2523_s17, %s2517_s29 }
  0x24   : > { %p2519_p12 = pnand %p2518_p11, %p2693_p5  ;;  %p2526_p2 = por %p2525_p1, %p2524_p0 }
  0x26   : > { %p2520_p13 = pneg %p2519_p12 }
  0x28   : > { %p2527_p3 = pnand %p2526_p2, %p2520_p13 }
  0xac   : > { %v442_v2 = vpop.xlane.xlu0 %441 }
  0xad   : > { %v444_v3 = vmul.f32 0.03125, %v442_v2  ;;  %v479_v2 = vld [vmem:[%s3231_s3 + $0x58] sm:$0xff] }
  0xaf   : > { %v445_v4 = vsub.f32 %v2708_v0, %v444_v3  ;;  %v491_v3 = vld [vmem:[%s3231_s3 + $0xb8] sm:$0xff] }
  0xb0   : > { %v2363_v9 = vpack.c.bf16 %v491_v3, %v479_v2 }
  0xb1   : > { %v446_v5 = vmul.f32 %v445_v4, %v445_v4 }
  0xb3   : > { %v447_v6 = vsel %vm439_vm0, %v446_v5, 0.0  ;;  %v2353_v5 = vpack.c.bf16 %v510_v62, %v498_v61 }
  0xb4   : > { %448 = vadd.xlane.f32.xlu0 %v447_v6  ;;  %v476_v6 = vld [vmem:[%s3231_s3 + $0x40] sm:$0xff] }
  0xb5   : > { %v2357_v16 = vpack.c.bf16 %v488_v7, %v476_v6 }
 0x141   : > { %v449_v38 = vpop.xlane.xlu0 %448 }
 0x142   : > { %v450_v39 = vmul.f32 0.03125, %v449_v38  ;;  %v538_v38 = vsub.s32 4, %v521_v27 }
 0x144   : > { %v451_v40 = vadd.f32 1e-05, %v450_v39  ;;  %v550_v39 = vsub.s32 7, %v521_v27 }
 0x146   : > { %2495 = vrsqrt.f32 %v451_v40  ;;  %v516_v40 = vld [vmem:[%s3232_s4] sm:$0xff] }
 0x147   : > { %v551_v44 = vrot.slane %v516_v40, %v550_v39  ;;  %v535_v49 = vrot.slane %v516_v40, %v534_v29  ;;  %v531_v62 = vrot.slane %v516_v40, %v530_v28 }
 0x150   : > { %v2496_v42 = vpop.eup %2495 }
 0x151   : > { %v453_v46 = vmul.f32 %v2496_v42, %v445_v4  ;;  %v2345_v4 = vpack.c.bf16 %v508_v57, %v496_v56  ;;  %v539_v42 = vrot.slane %v516_v40, %v538_v38 }
 0x153   : > { %v460_v53 = vmul.f32 %v2130_v41, %v453_v46  ;;  %v522_v41 = vsub.s32 0, %v521_v27  ;;  %v526_v46 = vsub.s32 1, %v521_v27 }
 0x155   : > { %v467_v58 = vadd.f32 %v2131_v43, %v460_v53  ;;  %v542_v43 = vsub.s32 5, %v521_v27  ;;  %v523_v45 = vrot.slane %v516_v40, %v522_v41  ;;  %v527_v57 = vrot.slane %v516_v40, %v526_v46 }
 0x156   : > { %v559_v61 = vrot.slane %v517_v30, %v526_v46 }
 0x157   : > { %2132 = vmatmul.mubr.msk.f32.vlgmr.msra.gmra.mrb[0].mxu0 %vm439_vm0, %v467_v58  ;;  %2133 = vmatmul.mubr.msk.f32.vlgmr.msra.gmra.mrb[0].mxu1 %vm439_vm0, %v467_v58  ;;  %v543_v52 = vrot.slane %v516_v40, %v542_v43 }
 0x158   : > { %2342 = vmatpush1.bf16.msra.mxu0 %v2341_v54  ;;  %2350 = vmatpush1.bf16.msra.mxu1 %v2349_v55 }
 0x159   : > { %2344 = vmatprep.subr.bf16.mxu0 %v2343_v59  ;;  %2352 = vmatprep.subr.bf16.mxu1 %v2351_v60  ;;  %v547_v59 = vrot.slane %v516_v40, %v546_v51 }
 0x15a   : > { %789 = vmatprep.mubr.f32.mxu0 %v2581_v37  ;;  %860 = vmatprep.mubr.f32.mxu1 %v2581_v37 }
 0x15c   : > { %2346 = vmatpush1.bf16.msra.mxu0 %v2345_v4  ;;  %2354 = vmatpush1.bf16.msra.mxu1 %v2353_v5  ;;  %v555_v4 = vrot.slane %v517_v30, %v522_v41 }
 0x15d   : > { %2356 = vmatprep.subr.bf16.mxu0 %v2355_v8  ;;  %2364 = vmatprep.subr.bf16.mxu1 %v2363_v9 }
 0x15f   : > { %2134 = vmatmul.mubr.msk.f32.vlgmr.msra.gmra.mrb[2].mxu0 %vm439_vm0, %v467_v58  ;;  %2135 = vmatmul.mubr.msk.f32.vlgmr.msra.gmra.mrb[2].mxu1 %vm439_vm0, %v467_v58 }
 0x160   : > { %2358 = vmatpush1.bf16.msra.mxu0 %v2357_v16  ;;  %2366 = vmatpush1.bf16.msra.mxu1 %v2365_v17 }
 0x161   : > { %2360 = vmatprep.subr.bf16.mxu0 %v2359_v19  ;;  %2368 = vmatprep.subr.bf16.mxu1 %v2367_v20 }
 0x162   : > { %931 = vmatprep.mubr.f32.mxu0 %v2581_v37  ;;  %1002 = vmatprep.mubr.f32.mxu1 %v2581_v37 }
 0x164   : > { %2362 = vmatpush1.bf16.msra.mxu0 %v2361_v24  ;;  %2370 = vmatpush1.bf16.msra.mxu1 %v2369_v25 }
 0x165   : > { %2253 = vmatprep.subr.mxu0 %v2581_v37  ;;  %2268 = vmatprep.subr.mxu1 %v2581_v37 }
 0x167   : > { %2136 = vmatmul.mubr.msk.f32.vlgmr.msra.gmra.mrb[4].mxu0 %vm439_vm0, %v467_v58  ;;  %2137 = vmatmul.mubr.msk.f32.vlgmr.msra.gmra.mrb[4].mxu1 %vm439_vm0, %v467_v58 }
 0x168   : > { %2255 = vmatprep.mubr.msk.f32.mxu0 %vm2582_vm1, %v2581_v37  ;;  %2270 = vmatprep.mubr.msk.f32.mxu1 %vm2582_vm1, %v2581_v37 }
 0x22a   : > { %v649_v33 = vpop.f32.mrb[0].mxu0  ;;  %v720_v34 = vpop.f32.mrb[0].mxu1 }
 0x22b   : > { %v651_v35 = vpop.f32.mrb[1].mxu0  ;;  %v722_v36 = vpop.f32.mrb[1].mxu1  ;;  %v650_v56 = vadd.f32 %v649_v33, %v523_v45  ;;  %v721_v10 = vadd.f32 %v720_v34, %v531_v62 }
 0x22c   : > { %v723_v58 = vadd.f32 %v722_v36, %v535_v49  ;;  %v652_v63 = vadd.f32 %v651_v35, %v527_v57  ;;  %v1678_v49 = vld [vmem:[%s3233_s5 + $0x180] sm:$0xff]  ;;  %v1647_v57 = vld [vmem:[%s3233_s5 + $0x88] sm:$0xff] }
 0x232   : > { %v791_v47 = vpop.f32.mrb[2].mxu0  ;;  %v862_v48 = vpop.f32.mrb[2].mxu1 }
 0x233   : > { %v792_v50 = vadd.f32 %v791_v47, %v539_v42  ;;  %v793_v53 = vpop.f32.mrb[3].mxu0  ;;  %v864_v54 = vpop.f32.mrb[3].mxu1  ;;  %v863_v3 = vadd.f32 %v862_v48, %v547_v59  ;;  %v1681_v59 = vld [vmem:[%s3233_s5 + $0x198] sm:$0xff] }
 0x234   : > { %v865_v55 = vadd.f32 %v864_v54, %v551_v44  ;;  %v794_v60 = vadd.f32 %v793_v53, %v543_v52  ;;  %v1662_v54 = vld [vmem:[%s3233_s5 + $0x100] sm:$0xff] }
 0x235   : > { %2254 = vmatpush3.xpose.msra.mxu0 %v792_v50  ;;  %v1679_v50 = vld [vmem:[%s3233_s5 + $0x188] sm:$0xff] }
 0x236   : > { %2269 = vmatpush3.xpose.msra.mxu1 %v865_v55  ;;  %2258 = vmatprep.subr.mxu0 %v2581_v37  ;;  %v2403_v53 = vpack.c.bf16 %v1679_v50, %v1678_v49  ;;  %v1663_v55 = vld [vmem:[%s3233_s5 + $0x108] sm:$0xff]  ;;  %v1654_v49 = vld [vmem:[%s3233_s5 + $0xc0] sm:$0xff] }
 0x237   : > { %2278 = vmatprep.subr.mxu1 %v2581_v37  ;;  %v1655_v50 = vld [vmem:[%s3233_s5 + $0xc8] sm:$0xff] }
 0x238   : > { %2256 = vmatmul.mubr.f32.vlgmr.msra.gmra.mrb[6].mxu0 %v650_v56  ;;  %v1646_v56 = vld [vmem:[%s3233_s5 + $0x80] sm:$0xff] }
 0x239   : > { %2259 = vmatpush3.xpose.msra.mxu0 %v794_v60  ;;  %2271 = vmatmul.mubr.f32.vlgmr.msra.gmra.mrb[6].mxu1 %v723_v58  ;;  %v1680_v58 = vld [vmem:[%s3233_s5 + $0x190] sm:$0xff] }
 0x23a   : > { %v933_v1 = vpop.f32.mrb[4].mxu0  ;;  %v1004_v2 = vpop.f32.mrb[4].mxu1  ;;  %2260 = vmatprep.mubr.msk.f32.mxu0 %vm2582_vm1, %v2581_v37  ;;  %2263 = vmatprep.subr.mxu0 %v2581_v37 }
 0x23b   : > { %v2893_v5 = vadd.f32 %v1004_v2, %v563_v31  ;;  %v935_v6 = vpop.f32.mrb[5].mxu0  ;;  %v1006_v7 = vpop.f32.mrb[5].mxu1  ;;  %2280 = vmatprep.mubr.msk.f32.mxu1 %vm2582_vm1, %v2581_v37  ;;  %v934_v11 = vadd.f32 %v933_v1, %v555_v4  ;;  %v1630_v1 = vld [vmem:[%s3233_s5] sm:$0xff]  ;;  %v1664_v2 = vld [vmem:[%s3233_s5 + $0x110] sm:$0xff] }
 0x23c   : > { %v936_v8 = vadd.f32 %v935_v6, %v559_v61  ;;  %v2897_v9 = vadd.f32 %v1006_v7, %v567_v32  ;;  %2261 = vmatmul.mubr.f32.vlgmr.msra.gmra.mrb[8].mxu0 %v652_v63  ;;  %v2405_v61 = vpack.c.bf16 %v1663_v55, %v1662_v54  ;;  %v2371_v6 = vpack.c.bf16 %v1647_v57, %v1646_v56  ;;  %v1631_v7 = vld [vmem:[%s3233_s5 + $0x8] sm:$0xff]  ;;  %v1672_v54 = vld [vmem:[%s3233_s5 + $0x150] sm:$0xff]  ;;  %v1673_v55 = vld [vmem:[%s3233_s5 + $0x158] sm:$0xff] }
 0x23d   : > { %2264 = vmatpush3.xpose.msra.mxu0 %v863_v3  ;;  %2265 = vmatprep.mubr.msk.f32.mxu0 %vm2582_vm1, %v2581_v37  ;;  %v1665_v3 = vld [vmem:[%s3233_s5 + $0x118] sm:$0xff]  ;;  %v2387_v56 = vpack.c.bf16 %v1655_v50, %v1654_v49  ;;  %v1638_v57 = vld [vmem:[%s3233_s5 + $0x40] sm:$0xff] }
 0x23e   : > { %2279 = vmatpush3.msra.mxu1 %v936_v8  ;;  %2273 = vmatprep.subr.mxu0 %v2581_v37  ;;  %v2407_v8 = vpack.c.bf16 %v1681_v59, %v1680_v58  ;;  %v1639_v58 = vld [vmem:[%s3233_s5 + $0x48] sm:$0xff]  ;;  %v1656_v59 = vld [vmem:[%s3233_s5 + $0xd0] sm:$0xff] }
 0x23f   : > { %2288 = vmatprep.subr.mxu1 %v2581_v37 }
 0x240   : > { %2266 = vmatmul.mubr.f32.vlgmr.msra.gmra.mrb[10].mxu0 %v721_v10  ;;  %v1683_v10 = vld [vmem:[%s3233_s5 + $0x1a8] sm:$0xff] }
 0x241   : > { %2274 = vmatpush3.msra.mxu0 %v934_v11  ;;  %2275 = vmatprep.mubr.msk.f32.mxu0 %vm2582_vm1, %v2581_v37  ;;  %v1648_v11 = vld [vmem:[%s3233_s5 + $0x90] sm:$0xff] }
 0x242   : > { %2283 = vmatprep.subr.mxu0 %v2581_v37 }
 0x30b   : > { %v1075_v12 = vpop.f32.mrb[6].mxu0 }
 0x30c   : > { %v2257_v13 = vpop.f32.mrb[7].mxu0  ;;  %v1285_v14 = vpop.f32.mrb[6].mxu1  ;;  %v1290_v22 = vsel %vm1289_vm2, %v1075_v12, -inf }
 0x30d   : > { %v2272_v15 = vpop.f32.mrb[7].mxu1  ;;  %v1299_v16 = vsel %vm1289_vm2, %v1285_v14, -inf }
 0x30e   : > { %1300 = vmax.xlane.f32.xlu0 %v1299_v16  ;;  %v2373_v16 = vpack.c.bf16 %v1631_v7, %v1630_v1  ;;  %v1640_v1 = vld [vmem:[%s3233_s5 + $0x50] sm:$0xff] }
 0x30f   : > { %v1145_v17 = vpop.f32.mrb[8].mxu0 }
 0x310   : > { %v2262_v18 = vpop.f32.mrb[9].mxu0  ;;  %v1293_v19 = vsel %vm1289_vm2, %v1145_v17, -inf }
 0x311   : > { %1294 = vmax.xlane.f32.xlu1 %v1293_v19  ;;  %v1666_v19 = vld [vmem:[%s3233_s5 + $0x120] sm:$0xff] }
 0x313   : > { %v1215_v20 = vpop.f32.mrb[10].mxu0 }
 0x314   : > { %v2267_v21 = vpop.f32.mrb[11].mxu0  ;;  %v1296_v23 = vsel %vm1289_vm2, %v1215_v20, -inf }
 0x315   : > { %1291 = vmax.xlane.f32.xlu1 %v1290_v22  ;;  %v1684_v22 = vld [vmem:[%s3233_s5 + $0x1b0] sm:$0xff] }
 0x319   : > { %1297 = vmax.xlane.f32.xlu1 %v1296_v23  ;;  %v1685_v23 = vld [vmem:[%s3233_s5 + $0x1b8] sm:$0xff] }
 0x39b   : > { %v1301_v24 = vpop.xlane.xlu0 %1300 }
 0x39c   : > { %v1305_v25 = vsub.f32 %v1285_v14, %v1301_v24  ;;  %v2409_v14 = vpack.c.bf16 %v1665_v3, %v1664_v2  ;;  %v1650_v24 = vld [vmem:[%s3233_s5 + $0xa0] sm:$0xff]  ;;  %v1641_v2 = vld [vmem:[%s3233_s5 + $0x58] sm:$0xff] }
 0x39d   : > { %v1658_v3 = vld [vmem:[%s3233_s5 + $0xe0] sm:$0xff] }
 0x39e   : > { %v1295_v26 = vpop.xlane.xlu1 %1294  ;;  %v1312_v28 = vmul.f32 1.442695, %v1305_v25  ;;  %v1651_v25 = vld [vmem:[%s3233_s5 + $0xa8] sm:$0xff] }
 0x39f   : > { %v1303_v27 = vsub.f32 %v1145_v17, %v1295_v26  ;;  %v1632_v17 = vld [vmem:[%s3233_s5 + $0x10] sm:$0xff] }
 0x3a1   : > { %v1308_v29 = vmul.f32 1.442695, %v1303_v27 }
 0x3a2   : > { %v1292_v30 = vpop.xlane.xlu1 %1291 }
 0x3a3   : > { %2497 = vpow2.f32 %v1308_v29  ;;  %v1302_v31 = vsub.f32 %v1075_v12, %v1292_v30  ;;  %v1649_v12 = vld [vmem:[%s3233_s5 + $0x98] sm:$0xff]  ;;  %v2415_v29 = vpack.c.bf16 %v1685_v23, %v1684_v22  ;;  %v1668_v30 = vld [vmem:[%s3233_s5 + $0x130] sm:$0xff] }
 0x3a4   : > { %2499 = vpow2.f32 %v1312_v28  ;;  %v2375_v21 = vpack.c.bf16 %v1649_v12, %v1648_v11  ;;  %v1634_v28 = vld [vmem:[%s3233_s5 + $0x20] sm:$0xff]  ;;  %v1660_v11 = vld [vmem:[%s3233_s5 + $0xf0] sm:$0xff]  ;;  %v1661_v12 = vld [vmem:[%s3233_s5 + $0xf8] sm:$0xff] }
 0x3a5   : > { %v1306_v32 = vmul.f32 1.442695, %v1302_v31  ;;  %v1669_v31 = vld [vmem:[%s3233_s5 + $0x138] sm:$0xff]  ;;  %v1692_v22 = vld [vmem:[%s3233_s5 + $0x1f0] sm:$0xff] }
 0x3a6   : > { %v1298_v33 = vpop.xlane.xlu1 %1297  ;;  %v1693_v23 = vld [vmem:[%s3233_s5 + $0x1f8] sm:$0xff] }
 0x3a7   : > { %2501 = vpow2.f32 %v1306_v32  ;;  %v1304_v34 = vsub.f32 %v1215_v20, %v1298_v33  ;;  %v1667_v20 = vld [vmem:[%s3233_s5 + $0x128] sm:$0xff]  ;;  %v2379_v32 = vpack.c.bf16 %v1651_v25, %v1650_v24  ;;  %v2431_v24 = vpack.c.bf16 %v1693_v23, %v1692_v22  ;;  %v1676_v25 = vld [vmem:[%s3233_s5 + $0x170] sm:$0xff] }
 0x3a8   : > { %v2413_v26 = vpack.c.bf16 %v1667_v20, %v1666_v19  ;;  %v1635_v33 = vld [vmem:[%s3233_s5 + $0x28] sm:$0xff]  ;;  %v1674_v20 = vld [vmem:[%s3233_s5 + $0x160] sm:$0xff] }
 0x3a9   : > { %v1310_v35 = vmul.f32 1.442695, %v1304_v34  ;;  %v1686_v34 = vld [vmem:[%s3233_s5 + $0x1c0] sm:$0xff] }
 0x3ab   : > { %2503 = vpow2.f32 %v1310_v35  ;;  %v1687_v35 = vld [vmem:[%s3233_s5 + $0x1c8] sm:$0xff] }
 0x3ad   : > { %v2498_v36 = vpop.eup %2497 }
 0x3ae   : > { %v1317_v38 = vsel %vm1289_vm2, %v2498_v36, 0.0  ;;  %v2500_v39 = vpop.eup %2499 }
 0x3af   : > { %1318 = vadd.xlane.f32.xlu0 %v1317_v38  ;;  %v1323_v41 = vsel %vm1289_vm2, %v2500_v39, 0.0  ;;  %v1653_v38 = vld [vmem:[%s3233_s5 + $0xb8] sm:$0xff] }
 0x3b1   : > { %v2502_v40 = vpop.eup %2501 }
 0x3b2   : > { %v1314_v42 = vsel %vm1289_vm2, %v2502_v40, 0.0 }
 0x3b3   : > { %1324 = vadd.xlane.f32.xlu0 %v1323_v41  ;;  %1315 = vadd.xlane.f32.xlu1 %v1314_v42  ;;  %v1636_v41 = vld [vmem:[%s3233_s5 + $0x30] sm:$0xff]  ;;  %v2419_v42 = vpack.c.bf16 %v1687_v35, %v1686_v34 }
 0x3b5   : > { %v2504_v43 = vpop.eup %2503 }
 0x3b6   : > { %v1320_v44 = vsel %vm1289_vm2, %v2504_v43, 0.0 }
 0x3b7   : > { %1321 = vadd.xlane.f32.xlu1 %v1320_v44  ;;  %v1671_v44 = vld [vmem:[%s3233_s5 + $0x148] sm:$0xff] }
 0x43c   : > { %v1319_v45 = vpop.xlane.xlu0 %1318 }
 0x43d   : > { %2505 = vrcp.f32 %v1319_v45 }
 0x440   : > { %v1325_v46 = vpop.xlane.xlu0 %1324  ;;  %v1316_v47 = vpop.xlane.xlu1 %1315 }
 0x441   : > { %2507 = vrcp.f32 %v1325_v46  ;;  %v1637_v46 = vld [vmem:[%s3233_s5 + $0x38] sm:$0xff] }
 0x442   : > { %2509 = vrcp.f32 %v1316_v47  ;;  %v1688_v47 = vld [vmem:[%s3233_s5 + $0x1d0] sm:$0xff] }
 0x444   : > { %v1322_v48 = vpop.xlane.xlu1 %1321 }
 0x445   : > { %2511 = vrcp.f32 %v1322_v48  ;;  %v1689_v48 = vld [vmem:[%s3233_s5 + $0x1d8] sm:$0xff] }
 0x447   : > { %v2506_v51 = vpop.eup %2505 }
 0x448   : > { %v1335_v52 = vmul.f32 %v2506_v51, %v2498_v36  ;;  %v1652_v36 = vld [vmem:[%s3233_s5 + $0xb0] sm:$0xff] }
 0x449   : > { %v2383_v45 = vpack.c.bf16 %v1653_v38, %v1652_v36 }
 0x44a   : > { %2281 = vmatmul.mubr.msk.f32.vlgmr.msra.gmra.mrb[8].mxu1 %vm1289_vm2, %v1335_v52  ;;  %v2385_v52 = vpack.c.bf16 %v1637_v46, %v1636_v41 }
 0x44b   : > { %v2508_v60 = vpop.eup %2507  ;;  %2289 = vmatpush3.msra.mxu1 %v2897_v9  ;;  %2290 = vmatprep.mubr.msk.f32.mxu1 %vm2582_vm1, %v2581_v37  ;;  %v1682_v9 = vld [vmem:[%s3233_s5 + $0x1a0] sm:$0xff] }
 0x44c   : > { %v2510_v62 = vpop.eup %2509  ;;  %v1337_v63 = vmul.f32 %v2508_v60, %v2500_v39  ;;  %2404 = vmatprep.subr.bf16.mxu1 %v2403_v53  ;;  %v2411_v18 = vpack.c.bf16 %v1683_v10, %v1682_v9  ;;  %v2417_v39 = vpack.c.bf16 %v1669_v31, %v1668_v30  ;;  %v2423_v53 = vpack.c.bf16 %v1689_v48, %v1688_v47  ;;  %v1657_v60 = vld [vmem:[%s3233_s5 + $0xd8] sm:$0xff]  ;;  %v1643_v9 = vld [vmem:[%s3233_s5 + $0x68] sm:$0xff] }
 0x44d   : > { %v1334_v4 = vmul.f32 %v2510_v62, %v2502_v40  ;;  %v2381_v40 = vpack.c.bf16 %v1635_v33, %v1634_v28  ;;  %v2389_v62 = vpack.c.bf16 %v1639_v58, %v1638_v57 }
 0x44e   : > { %2291 = vmatmul.mubr.msk.f32.vlgmr.msra.gmra.mrb[10].mxu1 %vm1289_vm2, %v1337_v63  ;;  %v2391_v63 = vpack.c.bf16 %v1657_v60, %v1656_v59 }
 0x44f   : > { %v2512_v13 = vpop.eup %2511  ;;  %2276 = vmatmul.mubr.msk.f32.vlgmr.msra.gmra.mrb[12].mxu0 %vm1289_vm2, %v1334_v4  ;;  %2406 = vmatpush3.bf16.msra.mxu1 %v2405_v61  ;;  %v2425_v61 = vpack.c.bf16 %v1673_v55, %v1672_v54  ;;  %v1659_v4 = vld [vmem:[%s3233_s5 + $0xe8] sm:$0xff]  ;;  %v2583_v54 = vmov 0.0|0.0   ;;  %v1873_v55 = vld [vmem:[%s3237_s9 + $0x10] sm:$0xff] }
 0x450   : > { %v1336_v15 = vmul.f32 %v2512_v13, %v2504_v43  ;;  %2284 = vmatpush3.msra.mxu0 %v2893_v5  ;;  %2285 = vmatprep.mubr.msk.f32.mxu0 %vm2582_vm1, %v2581_v37  ;;  %v1633_v5 = vld [vmem:[%s3233_s5 + $0x18] sm:$0xff]  ;;  %v1670_v43 = vld [vmem:[%s3233_s5 + $0x140] sm:$0xff]  ;;  %v2395_v7 = vpack.c.bf16 %v1659_v4, %v1658_v3 }
 0x451   : > { %2372 = vmatprep.subr.bf16.mxu0 %v2371_v6  ;;  %2408 = vmatprep.subr.bf16.mxu1 %v2407_v8  ;;  %v2377_v27 = vpack.c.bf16 %v1633_v5, %v1632_v17  ;;  %v2421_v51 = vpack.c.bf16 %v1671_v44, %v1670_v43  ;;  %v2393_v6 = vpack.c.bf16 %v1641_v2, %v1640_v1  ;;  %v1642_v8 = vld [vmem:[%s3233_s5 + $0x60] sm:$0xff]  ;;  %v1645_v17 = vld [vmem:[%s3233_s5 + $0x78] sm:$0xff] }
 0x452   : > { %v2397_v10 = vpack.c.bf16 %v1643_v9, %v1642_v8  ;;  %v1690_v13 = vld [vmem:[%s3233_s5 + $0x1e0] sm:$0xff]  ;;  %v1962_v8 = vld [vmem:[%s3239_s11 + $0x10] sm:$0xff]  ;;  %v1963_v9 = vld [vmem:[%s3239_s11 + $0x18] sm:$0xff] }
 0x453   : > { %2286 = vmatmul.mubr.msk.f32.vlgmr.msra.gmra.mrb[14].mxu0 %vm1289_vm2, %v1336_v15  ;;  %2410 = vmatpush3.bf16.msra.mxu1 %v2409_v14  ;;  %v2399_v14 = vpack.c.bf16 %v1661_v12, %v1660_v11  ;;  %v1691_v15 = vld [vmem:[%s3233_s5 + $0x1e8] sm:$0xff]  ;;  %v2144_v1 = vld [vmem:[%s3236_s8] ss:$0 sm:$0xff] }
 0x454   : > { %2374 = vmatpush3.bf16.msra.mxu0 %v2373_v16  ;;  %2412 = vmatprep.subr.bf16.mxu1 %v2411_v18  ;;  %v1644_v16 = vld [vmem:[%s3233_s5 + $0x70] sm:$0xff]  ;;  %v2427_v18 = vpack.c.bf16 %v1691_v15, %v1690_v13  ;;  %v1960_v4 = vld [vmem:[%s3239_s11] sm:$0xff]  ;;  %v1965_v12 = vld [vmem:[%s3239_s11 + $0x28] sm:$0xff] }
 0x455   : > { %2376 = vmatprep.subr.bf16.mxu0 %v2375_v21  ;;  %v2401_v19 = vpack.c.bf16 %v1645_v17, %v1644_v16  ;;  %v1675_v21 = vld [vmem:[%s3233_s5 + $0x168] sm:$0xff]  ;;  %v1964_v11 = vld [vmem:[%s3239_s11 + $0x20] sm:$0xff]  ;;  %v1967_v15 = vld [vmem:[%s3239_s11 + $0x38] sm:$0xff] }
 0x456   : > { %v2429_v5 = vpack.c.bf16 %v1675_v21, %v1674_v20  ;;  %v2448_v13 = vpack.c.bf16 %v1965_v12, %v1964_v11  ;;  %v2145_v17 = vld [vmem:[%s3238_s10] ss:$0 sm:$0xff] }
 0x457   : > { %2414 = vmatpush3.bf16.msra.mxu1 %v2413_v26  ;;  %v1677_v26 = vld [vmem:[%s3233_s5 + $0x178] sm:$0xff] }
 0x458   : > { %2378 = vmatpush3.bf16.msra.mxu0 %v2377_v27  ;;  %2416 = vmatprep.subr.bf16.mxu1 %v2415_v29  ;;  %v2433_v27 = vpack.c.bf16 %v1677_v26, %v1676_v25  ;;  %v2147_v25 = vld [vmem:[%s3240_s12] ss:$0 sm:$0xff] }
 0x459   : > { %2380 = vmatprep.subr.bf16.mxu0 %v2379_v32 }
 0x45b   : > { %2418 = vmatpush3.bf16.msra.mxu1 %v2417_v39 }
 0x45c   : > { %2382 = vmatpush3.bf16.msra.mxu0 %v2381_v40  ;;  %2420 = vmatprep.subr.bf16.mxu1 %v2419_v42  ;;  %v2142_v40 = vld [vmem:[%s3234_s6] ss:$0 sm:$0xff] }
 0x45d   : > { %2384 = vmatprep.subr.bf16.mxu0 %v2383_v45 }
 0x45f   : > { %2422 = vmatpush3.bf16.msra.mxu1 %v2421_v51 }
 0x460   : > { %2386 = vmatpush3.bf16.msra.mxu0 %v2385_v52  ;;  %2424 = vmatprep.subr.bf16.mxu1 %v2423_v53  ;;  %v1871_v52 = vld [vmem:[%s3237_s9] sm:$0xff] }
 0x461   : > { %2388 = vmatprep.subr.bf16.mxu0 %v2387_v56  ;;  %v1874_v56 = vld [vmem:[%s3237_s9 + $0x18] sm:$0xff] }
 0x462   : > { %v2439_v57 = vpack.c.bf16 %v1874_v56, %v1873_v55 }
 0x463   : > { %2426 = vmatpush3.bf16.msra.mxu1 %v2425_v61 }
 0x464   : > { %2390 = vmatpush3.bf16.msra.mxu0 %v2389_v62  ;;  %2428 = vmatprep.subr.bf16.mxu1 %v2427_v18  ;;  %v2143_v62 = vld [vmem:[%s3235_s7] ss:$0 sm:$0xff] }
 0x465   : > { %2392 = vmatprep.subr.bf16.mxu0 %v2391_v63 }
 0x467   : > { %2430 = vmatpush3.bf16.msra.mxu1 %v2429_v5 }
 0x468   : > { %2394 = vmatpush3.bf16.msra.mxu0 %v2393_v6  ;;  %2432 = vmatprep.subr.bf16.mxu1 %v2431_v24  ;;  %v1961_v6 = vld [vmem:[%s3239_s11 + $0x8] sm:$0xff] }
 0x469   : > { %2396 = vmatprep.subr.bf16.mxu0 %v2395_v7  ;;  %v2442_v7 = vpack.c.bf16 %v1961_v6, %v1960_v4 }
 0x46b   : > { %2434 = vmatpush3.bf16.msra.mxu1 %v2433_v27 }
 0x46c   : > { %2398 = vmatpush3.bf16.msra.mxu0 %v2397_v10  ;;  %2441 = vmatprep.subr.bf16.mxu1 %v2583_v54  ;;  %v2445_v10 = vpack.c.bf16 %v1963_v9, %v1962_v8 }
 0x46d   : > { %2400 = vmatprep.subr.bf16.mxu0 %v2399_v14  ;;  %v1966_v14 = vld [vmem:[%s3239_s11 + $0x30] sm:$0xff] }
 0x46e   : > { %v2451_v16 = vpack.c.bf16 %v1967_v15, %v1966_v14 }
 0x470   : > { %2402 = vmatpush3.bf16.msra.mxu0 %v2401_v19 }
 0x471   : > { %2435 = vmatprep.subr.bf16.mxu0 %v2583_v54 }
 0x51d   : > { %v1480_v28 = vpop.f32.mrb[8].mxu1 }
 0x51e   : > { %v2282_v29 = vpop.f32.mrb[9].mxu1  ;;  %1765 = vmatprep.mubr.f32.mxu0 %v1480_v28 }
 0x521   : > { %v1626_v30 = vpop.f32.mrb[10].mxu1 }
 0x522   : > { %v1407_v31 = vpop.f32.mrb[12].mxu0  ;;  %v2292_v32 = vpop.f32.mrb[11].mxu1  ;;  %1835 = vmatprep.mubr.f32.mxu1 %v1626_v30 }
 0x523   : > { %v2277_v33 = vpop.f32.mrb[13].mxu0  ;;  %1766 = vmatmul.mubr.f32.vlgmr.msra.gmra.mrb[16].mxu0 %v1407_v31 }
 0x524   : > { %2301 = vmatprep.mubr.msk.f32.mxu0 %vm2582_vm1, %v2581_v37 }
 0x526   : > { %v1553_v34 = vpop.f32.mrb[14].mxu0 }
 0x527   : > { %v2287_v35 = vpop.f32.mrb[15].mxu0  ;;  %1836 = vmatmul.mubr.f32.vlgmr.msra.gmra.mrb[12].mxu1 %v1553_v34 }
 0x528   : > { %2320 = vmatprep.mubr.msk.f32.mxu1 %vm2582_vm1, %v2581_v37  ;;  %2443 = vmatpush3.bf16.msra.mxu1 %v2442_v7 }
 0x529   : > { %2444 = vmatprep.subr.bf16.mxu1 %v2583_v54 }
 0x52c   : > { %2446 = vmatpush3.bf16.msra.mxu1 %v2445_v10 }
 0x52d   : > { %2447 = vmatprep.subr.bf16.mxu1 %v2583_v54 }
 0x530   : > { %2449 = vmatpush3.bf16.msra.mxu1 %v2448_v13 }
 0x531   : > { %2450 = vmatprep.subr.bf16.mxu1 %v2583_v54 }
 0x534   : > { %2452 = vmatpush3.bf16.msra.mxu1 %v2451_v16 }
 0x5f6   : > { %v2201_v36 = vpop.f32.mrb[16].mxu0 }
 0x5f7   : > { %v2202_v38 = vpop.f32.mrb[17].mxu0 }
 0x5f8   : > { %v2203_v39 = vadd.f32 %v2202_v38, %v2201_v36 }
 0x5fa   : > { %v2236_v41 = vpop.f32.mrb[12].mxu1  ;;  %v1768_v43 = vadd.f32 %v2203_v39, %v2142_v40 }
 0x5fb   : > { %v2237_v42 = vpop.f32.mrb[13].mxu1 }
 0x5fc   : > { %v2238_v44 = vadd.f32 %v2237_v42, %v2236_v41 }
 0x5fe   : > { %v1838_v45 = vadd.f32 %v2238_v44, %v1768_v43 }
 0x600   : > { %v3124_v46 = vadd.f32 %v1838_v45, %v2708_v0  ;;  %v1872_v0 = vld [vmem:[%s3237_s9 + $0x8] sm:$0xff] }
 0x601   : > { %v2436_v53 = vpack.c.bf16 %v1872_v0, %v1871_v52 }
 0x602   : > { %v1844_v47 = vsel %vm439_vm0, %v3124_v46, 0.0 }
 0x603   : > { %1845 = vadd.xlane.f32.xlu0 %v1844_v47  ;;  %2437 = vmatpush3.bf16.msra.mxu0 %v2436_v53 }
 0x604   : > { %2438 = vmatprep.subr.bf16.mxu0 %v2583_v54 }
 0x607   : > { %2440 = vmatpush3.bf16.msra.mxu0 %v2439_v57 }
 0x690   : > { %v1846_v37 = vpop.xlane.xlu0 %1845 }
 0x691   : > { %v1847_v48 = vmul.f32 0.03125, %v1846_v37 }
 0x693   : > { %v1848_v49 = vsub.f32 %v3124_v46, %v1847_v48 }
 0x695   : > { %v1849_v50 = vmul.f32 %v1848_v49, %v1848_v49 }
 0x697   : > { %v1850_v51 = vsel %vm439_vm0, %v1849_v50, 0.0 }
 0x698   : > { %1851 = vadd.xlane.f32.xlu1 %v1850_v51 }
 0x725   : > { %v1852_v58 = vpop.xlane.xlu1 %1851 }
 0x726   : > { %v1853_v59 = vmul.f32 0.03125, %v1852_v58 }
 0x728   : > { %v1854_v60 = vadd.f32 1e-05, %v1853_v59 }
 0x72a   : > { %2513 = vrsqrt.f32 %v1854_v60 }
 0x734   : > { %v2514_v61 = vpop.eup %2513 }
 0x735   : > { %v1856_v63 = vmul.f32 %v2514_v61, %v1848_v49 }
 0x737   : > { %v1863_v2 = vmul.f32 %v2143_v62, %v1856_v63 }
 0x739   : > { %v1870_v3 = vadd.f32 %v2144_v1, %v1863_v2 }
 0x73b   : > { %2302 = vmatmul.mubr.msk.f32.vlgmr.msra.gmra.mrb[18].mxu0 %vm439_vm0, %v1870_v3 }
 0x80e   : > { %v1951_v18 = vpop.f32.mrb[18].mxu0 }
 0x80f   : > { %v1952_v19 = vadd.f32 %v2145_v17, %v1951_v18  ;;  %v2303_v20 = vpop.f32.mrb[19].mxu0 }
 0x811   : > { %v1956_v21 = vmul.f32 0.70710677, %v1952_v19  ;;  %v1955_v22 = vmul.f32 0.5, %v1952_v19 }
 0x813   : > { %2515 = verf.f32 %v1956_v21 }
 0x81d   : > { %v2516_v5 = vpop.eup %2515 }
 0x81e   : > { %v1958_v23 = vadd.f32 1.0, %v2516_v5 }
 0x820   : > { %v1959_v24 = vmul.f32 %v1958_v23, %v1955_v22 }
 0x822   : > { %2321 = vmatmul.mubr.msk.f32.vlgmr.msra.gmra.mrb[14].mxu1 %vm1975_vm3, %v1959_v24 }
 0x8f5   : > { %v2045_v26 = vpop.f32.mrb[14].mxu1 }
 0x8f6   : > { %v2046_v27 = vadd.f32 %v2147_v25, %v2045_v26  ;;  %v2322_v28 = vpop.f32.mrb[15].mxu1 }
 0x8f8   : > { %v2049_v29 = vadd.f32 %v2046_v27, %v3124_v46 }
 0x8fa   : > { %2050 = vst.msk [vmem:[%s431_s23] sm:$0xff] %vm439_vm0, %v2049_v29 }
 0x8fb   : > { %2530 = shalt.err (!%p2527_p3)
}
 0x8fc   : > { %s2531_s21 = scalar_lea.hbm %s3185_s15, 128  ;;  %s2535_s23 = scalar_lea.hbm %s3241_s13, 256 }
 0x8fd   : > { %p2532_p4 = scmp.ne.s32.totalorder %s3185_s15, %s2531_s21  ;;  %p2536_p9 = scmp.lt.u32.totalorder %s3185_s15, %s3241_s13 }
 0x8fe   : > { %p2537_p10 = scmp.lt.u32.totalorder %s2535_s23, %s2531_s21  ;;  %p2539_p12 = scmp.lt.u32.totalorder %s2531_s21, %s3185_s15 }
 0x8ff   : > { %p2533_p7 = pnand %p2532_p4, %p2693_p5 }
 0x900   : > { %p2538_p11 = por %p2537_p10, %p2536_p9 }
 0x901   : > { %p2534_p8 = pneg %p2533_p7 }
 0x902   : > { %p2540_p13 = por %p2539_p12, %p2538_p11 }
 0x904   : > { %p2541_p0 = pnand %p2540_p13, %p2534_p8 }
 0x906   : > { %2544 = shalt.err (!%p2541_p0)
}
 0x907   : > { %2453 = dma.vmem_to_hbm [thread:$0]  (%p2693_p5), %s3187_s1, 128, %s3185_s15, %s2052_s16  }
 0x908 PF: > { %p2459_p1 = scmp.ge.s32.totalorder %s2579_s28, 2  ;;  %s2077_s29 = sand.u32 1, %s2567_s25  }
 0x909   : > { %s2078_s20 = scalar_lea.sflag [#allocation3], %s2077_s29 }
 0x90a   : > { %p2456_p2 = pnand %p2459_p1, %p2697_p6 }
 0x90c   : > { %2562 = dma.done.wait (!%p2456_p2), %s2078_s20, 128  }
 0x90d   : > { %2564 = vsyncadd (!%p2456_p2), %s2078_s20, 4294967168  ;;  %s3251_s0 = sld [smem:[#allocation5_spill]]  ;;  %s3252_s27 = sld [smem:[#allocation6_spill]] }
 0x90e   : > { %p23_p3 = scmp.ge.s32.totalorder %s2680_s14, 4   ;;  %s3253_s25 = smov %s2571_s26 }
 0x90f   : > { %s3255_s28 = smov %s2680_s14 }
 0x910   :  { %25 = sbr.rel (!%p23_p3) target bundleno = 6 (0x6), region = 107 }
 0x913   : > { %s3254_s26 = smov %s3251_s0 }
 0x917   :  { %2083 = vsyncpa [#allocation3], 1 }
 0x918   :  { %2085 = vsyncpa [#allocation3 + $0x1], 1 }

// kernel: tpu_custom_call.1
= control target key start
LH: loop header
LB: loop body
LE: loop exit
PB: predicated region body
PF: predicated region fallthrough
CT: control target
= control target key end

     0   :  { %s3228_s0 = inlined_call_operand.vmem [shape: f32[2,8,32], index: 0, kind: input, shape index: {}]   ;;  %s3229_s1 = inlined_call_operand.vmem [shape: f32[1,32], index: 1, kind: input, shape index: {}]   ;;  %s3230_s2 = inlined_call_operand.vmem [shape: f32[1,32], index: 2, kind: input, shape index: {}]   ;;  %s3231_s3 = inlined_call_operand.vmem [shape: f32[32,1536], index: 3, kind: input, shape index: {}]   ;;  %s3232_s4 = inlined_call_operand.vmem [shape: f32[1,1536], index: 4, kind: input, shape index: {}]   ;;  %s3233_s5 = inlined_call_operand.vmem [shape: f32[512,32], index: 5, kind: input, shape index: {}]   ;;  %s3234_s6 = inlined_call_operand.vmem [shape: f32[1,32], index: 6, kind: input, shape index: {}]   ;;  %s3235_s7 = inlined_call_operand.vmem [shape: f32[1,32], index: 7, kind: input, shape index: {}]   ;;  %s3236_s8 = inlined_call_operand.vmem [shape: f32[1,32], index: 8, kind: input, shape index: {}]   ;;  %s3237_s9 = inlined_call_operand.vmem [shape: f32[32,64], index: 9, kind: input, shape index: {}]   ;;  %s3238_s10 = inlined_call_operand.vmem [shape: f32[1,64], index: 10, kind: input, shape index: {}]   ;;  %s3239_s11 = inlined_call_operand.vmem [shape: f32[64,32], index: 11, kind: input, shape index: {}]   ;;  %s3240_s12 = inlined_call_operand.vmem [shape: f32[1,32], index: 12, kind: input, shape index: {}]   ;;  %s3241_s13 = inlined_call_operand.hbm [shape: f32[2,8,32], index: 13, kind: output, shape index: {}]  }
   0x1   :  { %3243 = sst [smem:[#allocation7_spill]] %s3228_s0 }
   0x2   :  { %3244 = sst [smem:[#allocation8_spill]] %s3229_s1 }
   0x3   :  { %18 = vsyncpa [#allocation3], 0 }
   0x4   :  { %20 = vsyncpa [#allocation3 + $0x1], 0  ;;  %s2655_s25 = smov 0   ;;  %s2657_s26 = smov 0  }
   0x5   :  { %s2659_s27 = smov 0   ;;  %s2661_s28 = smov 0  }
   0x6 LB: > { %3245 = sst [smem:[#allocation5_spill]] %s2575_s27  ;;  %s2676_s29 = sadd.s32 4294967295, %s2579_s28   ;;  %s2579_s28 = sphi %s2661_s28, %s3255_s28   ;;  %s2575_s27 = sphi %s2659_s27, %s3252_s27   ;;  %s2571_s26 = sphi %s2657_s26, %s3254_s26   ;;  %s2567_s25 = sphi %s2655_s25, %s3253_s25  }
   0x7   : > { %s2124_s30 = sadd.s32 4294967294, %s2579_s28   ;;  %s2680_s14 = sadd.s32 1, %s2579_s28  }
   0x8   : > { %s311_s15 = sadd.s32 1, %s2575_s27  ;;  %s308_s16 = ssub.s32 %s2579_s28, %s2680_s14 }
   0x9   : > { %p321_p0 = scmp.ne.s32.totalorder %s2575_s27, %s2571_s26  ;;  %p309_p1 = scmp.eq.s32.totalorder %s308_s16, 0 }
   0xa   : > { %p322_p2 = scmp.eq.s32.totalorder %s2676_s29, 1  ;;  %p327_p3 = scmp.ne.s32.totalorder %s2571_s26, %s2567_s25 }
   0xb   : > { %p328_p4 = scmp.eq.s32.totalorder %s2124_s30, 1  ;;  %p2127_p7 = scmp.ge.s32.totalorder %s2579_s28, 1 }
   0xc   : > { %s2691_s17 = scalar_select %p309_p1, %s2575_s27, %s311_s15  }
   0xd   : > { %p2693_p5 = por %p322_p2, %p321_p0  ;;  %p2697_p6 = por %p328_p4, %p327_p3 }
   0xe   : > { %3246 = sst [smem:[#allocation6_spill]] %s2691_s17  ;;  %p389_p8 = scmp.lt.s32.totalorder %s2579_s28, 3 }
  0x10   : > { %p390_p9 = pnand %p2127_p7, %p389_p8 }
  0x11   : > { %p432_p10 = scmp.lt.s32.totalorder (!%p390_p9), %s2676_s29, 1  ;;  %vm439_vm0 = vcmask (!%p390_p9), 261120   ;;  %s3249_s0 = sld [smem:[#allocation7_spill]] (!%p390_p9)  ;;  %v469_v7 = vld [vmem:[%s3231_s3 + $0x8] sm:$0xff] (!%p390_p9)  ;;  %v471_v9 = vld [vmem:[%s3231_s3 + $0x18] sm:$0xff] (!%p390_p9)  ;;  %v468_v12 = vld [vmem:[%s3231_s3] sm:$0xff] (!%p390_p9) }
  0x12   : > { %393 = sbr.rel (%p390_p9) target bundleno = 2312 (0x908), region = 72  ;;  %v481_v8 = vld [vmem:[%s3231_s3 + $0x68] sm:$0xff] (!%p390_p9)  ;;  %v483_v11 = vld [vmem:[%s3231_s3 + $0x78] sm:$0xff] (!%p390_p9)  ;;  %v480_v13 = vld [vmem:[%s3231_s3 + $0x60] sm:$0xff] (!%p390_p9)  ;;  %v2581_v37 = vmov (!%p390_p9), 0.0   ;;  %s3250_s1 = sld [smem:[#allocation8_spill]] (!%p390_p9) }
  0x13   : > { %v2323_v10 = vpack.c.bf16 (!%p390_p9), %v481_v8, %v469_v7  ;;  %v2331_v14 = vpack.c.bf16 (!%p390_p9), %v483_v11, %v471_v9  ;;  %v2325_v15 = vpack.c.bf16 (!%p390_p9), %v480_v13, %v468_v12  ;;  %v470_v16 = vld [vmem:[%s3231_s3 + $0x10] sm:$0xff] (!%p390_p9)  ;;  %v493_v19 = vld [vmem:[%s3231_s3 + $0xc8] sm:$0xff] (!%p390_p9)  ;;  %v495_v21 = vld [vmem:[%s3231_s3 + $0xd8] sm:$0xff] (!%p390_p9)  ;;  %647 = vmatprep.mubr.f32.mxu0 (!%p390_p9), %v2581_v37  ;;  %718 = vmatprep.mubr.f32.mxu1 (!%p390_p9), %v2581_v37  ;;  %vm2582_vm1 = vmmov (!%p390_p9), 0   ;;  %s2150_s22 = sshll.u32 (!%p390_p9), %s2676_s29, 7 }
  0x14   : > { %v482_v17 = vld [vmem:[%s3231_s3 + $0x70] sm:$0xff] (!%p390_p9)  ;;  %v505_v20 = vld [vmem:[%s3231_s3 + $0x128] sm:$0xff] (!%p390_p9)  ;;  %v507_v23 = vld [vmem:[%s3231_s3 + $0x138] sm:$0xff] (!%p390_p9)  ;;  %vm1289_vm2 = vcmask (!%p390_p9), 64512   ;;  %vm1975_vm3 = vcmask (!%p390_p9), 523264   ;;  %s3185_s15 = scalar_lea.hbm (!%p390_p9), %s3241_s13, %s2150_s22 }
  0x15   : > { %2324 = vmatprep.subr.bf16.mxu0 (!%p390_p9), %v2323_v10  ;;  %v2333_v18 = vpack.c.bf16 (!%p390_p9), %v482_v17, %v470_v16  ;;  %2332 = vmatprep.subr.bf16.mxu1 (!%p390_p9), %v2331_v14  ;;  %v2327_v22 = vpack.c.bf16 (!%p390_p9), %v505_v20, %v493_v19  ;;  %v492_v24 = vld [vmem:[%s3231_s3 + $0xc0] sm:$0xff] (!%p390_p9)  ;;  %v2335_v26 = vpack.c.bf16 (!%p390_p9), %v507_v23, %v495_v21  ;;  %v494_v28 = vld [vmem:[%s3231_s3 + $0xd0] sm:$0xff] (!%p390_p9)  ;;  %v473_v31 = vld [vmem:[%s3231_s3 + $0x28] sm:$0xff] (!%p390_p9) }
  0x16   : > { %2326 = vmatpush1.bf16.msra.mxu0 (!%p390_p9), %v2325_v15  ;;  %v504_v25 = vld [vmem:[%s3231_s3 + $0x120] sm:$0xff] (!%p390_p9)  ;;  %v506_v29 = vld [vmem:[%s3231_s3 + $0x130] sm:$0xff] (!%p390_p9)  ;;  %v485_v32 = vld [vmem:[%s3231_s3 + $0x88] sm:$0xff] (!%p390_p9) }
  0x17   : > { %2334 = vmatpush1.bf16.msra.mxu1 (!%p390_p9), %v2333_v18  ;;  %v2329_v27 = vpack.c.bf16 (!%p390_p9), %v504_v25, %v492_v24  ;;  %2328 = vmatprep.subr.bf16.mxu0 (!%p390_p9), %v2327_v22  ;;  %v2337_v30 = vpack.c.bf16 (!%p390_p9), %v506_v29, %v494_v28  ;;  %v475_v33 = vld [vmem:[%s3231_s3 + $0x38] sm:$0xff] (!%p390_p9)  ;;  %v2339_v34 = vpack.c.bf16 (!%p390_p9), %v485_v32, %v473_v31  ;;  %v2131_v43 = vld [vmem:[%s3230_s2] ss:$0 sm:$0xff] (!%p390_p9)  ;;  %v474_v47 = vld [vmem:[%s3231_s3 + $0x30] sm:$0xff] (!%p390_p9) }
  0x18   : > { %2336 = vmatprep.subr.bf16.mxu1 (!%p390_p9), %v2335_v26  ;;  %v487_v35 = vld [vmem:[%s3231_s3 + $0x98] sm:$0xff] (!%p390_p9)  ;;  %v2130_v41 = vld [vmem:[%s3250_s1] ss:$0 sm:$0xff] (!%p390_p9)  ;;  %v486_v48 = vld [vmem:[%s3231_s3 + $0x90] sm:$0xff] (!%p390_p9)  ;;  %v520_v26 = vlaneseq (!%p390_p9) }
  0x19   : > { %s433_s20 = scalar_select %p432_p10, %s2676_s29, 1  ;;  %v2347_v36 = vpack.c.bf16 %v487_v35, %v475_v33  ;;  %v472_v44 = vld [vmem:[%s3231_s3 + $0x20] sm:$0xff]  ;;  %v497_v49 = vld [vmem:[%s3231_s3 + $0xe8] sm:$0xff]  ;;  %v499_v51 = vld [vmem:[%s3231_s3 + $0xf8] sm:$0xff]  ;;  %v2349_v55 = vpack.c.bf16 %v486_v48, %v474_v47 }
  0x1a   : > { %2330 = vmatpush1.bf16.msra.mxu0 %v2329_v27  ;;  %v484_v45 = vld [vmem:[%s3231_s3 + $0x80] sm:$0xff]  ;;  %v509_v50 = vld [vmem:[%s3231_s3 + $0x148] sm:$0xff]  ;;  %v511_v52 = vld [vmem:[%s3231_s3 + $0x158] sm:$0xff]  ;;  %v521_v27 = vshrl.u32 %v520_v26, 7 }
  0x1b   : > { %s2129_s21 = sshll.u32 %s433_s20, 3  ;;  %2338 = vmatpush1.bf16.msra.mxu1 %v2337_v30  ;;  %2340 = vmatprep.subr.bf16.mxu0 %v2339_v34  ;;  %v2341_v54 = vpack.c.bf16 %v484_v45, %v472_v44  ;;  %v496_v56 = vld [vmem:[%s3231_s3 + $0xe0] sm:$0xff]  ;;  %v2343_v59 = vpack.c.bf16 %v509_v50, %v497_v49  ;;  %v2351_v60 = vpack.c.bf16 %v511_v52, %v499_v51  ;;  %v498_v61 = vld [vmem:[%s3231_s3 + $0xf0] sm:$0xff]  ;;  %v477_v63 = vld [vmem:[%s3231_s3 + $0x48] sm:$0xff]  ;;  %s2584_s20 = smov [#allocation2]  }
  0x1c   : > { %s435_s24 = scalar_lea.vmem %s3249_s0, %s2129_s21  ;;  %2348 = vmatprep.subr.bf16.mxu1 %v2347_v36  ;;  %v508_v57 = vld [vmem:[%s3231_s3 + $0x140] sm:$0xff]  ;;  %v510_v62 = vld [vmem:[%s3231_s3 + $0x150] sm:$0xff]  ;;  %v501_v12 = vld [vmem:[%s3231_s3 + $0x108] sm:$0xff]  ;;  %v530_v28 = vsub.s32 2, %v521_v27  ;;  %v534_v29 = vsub.s32 3, %v521_v27  ;;  %v546_v51 = vsub.s32 6, %v521_v27 }
  0x1d   : > { %v2708_v0 = vld [vmem:[%s435_s24] sm:$0xff]  ;;  %v478_v10 = vld [vmem:[%s3231_s3 + $0x50] sm:$0xff]  ;;  %v513_v13 = vld [vmem:[%s3231_s3 + $0x168] sm:$0xff]  ;;  %s429_s21 = sand.u32 1, %s2571_s26  }
  0x1e   : > { %v440_v1 = vsel %vm439_vm0, %v2708_v0, 0.0  ;;  %v488_v7 = vld [vmem:[%s3231_s3 + $0xa0] sm:$0xff]  ;;  %v490_v11 = vld [vmem:[%s3231_s3 + $0xb0] sm:$0xff]  ;;  %v503_v14 = vld [vmem:[%s3231_s3 + $0x118] sm:$0xff]  ;;  %v2359_v19 = vpack.c.bf16 %v513_v13, %v501_v12  ;;  %s2128_s0 = sshll.u32 %s429_s21, 3  ;;  %s2052_s16 = scalar_lea.sflag [#allocation3], %s429_s21 }
  0x1f   : > { %441 = vadd.xlane.f32.xlu0 %v440_v1  ;;  %v489_v1 = vld [vmem:[%s3231_s3 + $0xa8] sm:$0xff]  ;;  %v515_v15 = vld [vmem:[%s3231_s3 + $0x178] sm:$0xff]  ;;  %v2365_v17 = vpack.c.bf16 %v490_v11, %v478_v10  ;;  %v500_v18 = vld [vmem:[%s3231_s3 + $0x100] sm:$0xff]  ;;  %s431_s23 = scalar_lea.vmem [#allocation2], %s2128_s0  ;;  %s2521_s0 = sshll.u32 %s2584_s20, 4  ;;  %s2522_s0 = int_to_ptr.vmem [resolvable:$false] %s2521_s0 }
  0x20   : > { %v2355_v8 = vpack.c.bf16 %v489_v1, %v477_v63  ;;  %v2367_v20 = vpack.c.bf16 %v515_v15, %v503_v14  ;;  %v512_v21 = vld [vmem:[%s3231_s3 + $0x160] sm:$0xff]  ;;  %v502_v22 = vld [vmem:[%s3231_s3 + $0x110] sm:$0xff]  ;;  %v517_v30 = vld [vmem:[%s3232_s4 + $0x8] sm:$0xf]  ;;  %s2065_s1 = sshll.u32 %s431_s23, 4  ;;  %s2523_s17 = scalar_lea.vmem %s2522_s0, 256  ;;  %s3187_s1 = int_to_ptr.vmem [resolvable:$true] %s2065_s1 }
  0x21   : > { %v514_v23 = vld [vmem:[%s3231_s3 + $0x170] sm:$0xff]  ;;  %v2361_v24 = vpack.c.bf16 %v512_v21, %v500_v18  ;;  %v563_v31 = vrot.slane %v517_v30, %v530_v28  ;;  %v567_v32 = vrot.slane %v517_v30, %v534_v29  ;;  %s2517_s29 = scalar_lea.vmem %s3187_s1, 128  ;;  %p2524_p0 = scmp.lt.s32.totalorder %s3187_s1, %s2522_s0 }
  0x22   : > { %v2369_v25 = vpack.c.bf16 %v514_v23, %v502_v22  ;;  %p2518_p11 = scmp.ne.s32.totalorder %s3187_s1, %s2517_s29  ;;  %p2525_p1 = scmp.lt.s32.totalorder %s2523_s17, %s2517_s29 }
  0x24   : > { %p2519_p12 = pnand %p2518_p11, %p2693_p5  ;;  %p2526_p2 = por %p2525_p1, %p2524_p0 }
  0x26   : > { %p2520_p13 = pneg %p2519_p12 }
  0x28   : > { %p2527_p3 = pnand %p2526_p2, %p2520_p13 }
  0xac   : > { %v442_v2 = vpop.xlane.xlu0 %441 }
  0xad   : > { %v444_v3 = vmul.f32 0.03125, %v442_v2  ;;  %v479_v2 = vld [vmem:[%s3231_s3 + $0x58] sm:$0xff] }
  0xaf   : > { %v445_v4 = vsub.f32 %v2708_v0, %v444_v3  ;;  %v491_v3 = vld [vmem:[%s3231_s3 + $0xb8] sm:$0xff] }
  0xb0   : > { %v2363_v9 = vpack.c.bf16 %v491_v3, %v479_v2 }
  0xb1   : > { %v446_v5 = vmul.f32 %v445_v4, %v445_v4 }
  0xb3   : > { %v447_v6 = vsel %vm439_vm0, %v446_v5, 0.0  ;;  %v2353_v5 = vpack.c.bf16 %v510_v62, %v498_v61 }
  0xb4   : > { %448 = vadd.xlane.f32.xlu0 %v447_v6  ;;  %v476_v6 = vld [vmem:[%s3231_s3 + $0x40] sm:$0xff] }
  0xb5   : > { %v2357_v16 = vpack.c.bf16 %v488_v7, %v476_v6 }
 0x141   : > { %v449_v38 = vpop.xlane.xlu0 %448 }
 0x142   : > { %v450_v39 = vmul.f32 0.03125, %v449_v38  ;;  %v538_v38 = vsub.s32 4, %v521_v27 }
 0x144   : > { %v451_v40 = vadd.f32 1e-05, %v450_v39  ;;  %v550_v39 = vsub.s32 7, %v521_v27 }
 0x146   : > { %2495 = vrsqrt.f32 %v451_v40  ;;  %v516_v40 = vld [vmem:[%s3232_s4] sm:$0xff] }
 0x147   : > { %v551_v44 = vrot.slane %v516_v40, %v550_v39  ;;  %v535_v49 = vrot.slane %v516_v40, %v534_v29  ;;  %v531_v62 = vrot.slane %v516_v40, %v530_v28 }
 0x150   : > { %v2496_v42 = vpop.eup %2495 }
 0x151   : > { %v453_v46 = vmul.f32 %v2496_v42, %v445_v4  ;;  %v2345_v4 = vpack.c.bf16 %v508_v57, %v496_v56  ;;  %v539_v42 = vrot.slane %v516_v40, %v538_v38 }
 0x153   : > { %v460_v53 = vmul.f32 %v2130_v41, %v453_v46  ;;  %v522_v41 = vsub.s32 0, %v521_v27  ;;  %v526_v46 = vsub.s32 1, %v521_v27 }
 0x155   : > { %v467_v58 = vadd.f32 %v2131_v43, %v460_v53  ;;  %v542_v43 = vsub.s32 5, %v521_v27  ;;  %v523_v45 = vrot.slane %v516_v40, %v522_v41  ;;  %v527_v57 = vrot.slane %v516_v40, %v526_v46 }
 0x156   : > { %v559_v61 = vrot.slane %v517_v30, %v526_v46 }
 0x157   : > { %2132 = vmatmul.mubr.msk.f32.vlgmr.msra.gmra.mrb[0].mxu0 %vm439_vm0, %v467_v58  ;;  %2133 = vmatmul.mubr.msk.f32.vlgmr.msra.gmra.mrb[0].mxu1 %vm439_vm0, %v467_v58  ;;  %v543_v52 = vrot.slane %v516_v40, %v542_v43 }
 0x158   : > { %2342 = vmatpush1.bf16.msra.mxu0 %v2341_v54  ;;  %2350 = vmatpush1.bf16.msra.mxu1 %v2349_v55 }
 0x159   : > { %2344 = vmatprep.subr.bf16.mxu0 %v2343_v59  ;;  %2352 = vmatprep.subr.bf16.mxu1 %v2351_v60  ;;  %v547_v59 = vrot.slane %v516_v40, %v546_v51 }
 0x15a   : > { %789 = vmatprep.mubr.f32.mxu0 %v2581_v37  ;;  %860 = vmatprep.mubr.f32.mxu1 %v2581_v37 }
 0x15c   : > { %2346 = vmatpush1.bf16.msra.mxu0 %v2345_v4  ;;  %2354 = vmatpush1.bf16.msra.mxu1 %v2353_v5  ;;  %v555_v4 = vrot.slane %v517_v30, %v522_v41 }
 0x15d   : > { %2356 = vmatprep.subr.bf16.mxu0 %v2355_v8  ;;  %2364 = vmatprep.subr.bf16.mxu1 %v2363_v9 }
 0x15f   : > { %2134 = vmatmul.mubr.msk.f32.vlgmr.msra.gmra.mrb[2].mxu0 %vm439_vm0, %v467_v58  ;;  %2135 = vmatmul.mubr.msk.f32.vlgmr.msra.gmra.mrb[2].mxu1 %vm439_vm0, %v467_v58 }
 0x160   : > { %2358 = vmatpush1.bf16.msra.mxu0 %v2357_v16  ;;  %2366 = vmatpush1.bf16.msra.mxu1 %v2365_v17 }
 0x161   : > { %2360 = vmatprep.subr.bf16.mxu0 %v2359_v19  ;;  %2368 = vmatprep.subr.bf16.mxu1 %v2367_v20 }
 0x162   : > { %931 = vmatprep.mubr.f32.mxu0 %v2581_v37  ;;  %1002 = vmatprep.mubr.f32.mxu1 %v2581_v37 }
 0x164   : > { %2362 = vmatpush1.bf16.msra.mxu0 %v2361_v24  ;;  %2370 = vmatpush1.bf16.msra.mxu1 %v2369_v25 }
 0x165   : > { %2253 = vmatprep.subr.mxu0 %v2581_v37  ;;  %2268 = vmatprep.subr.mxu1 %v2581_v37 }
 0x167   : > { %2136 = vmatmul.mubr.msk.f32.vlgmr.msra.gmra.mrb[4].mxu0 %vm439_vm0, %v467_v58  ;;  %2137 = vmatmul.mubr.msk.f32.vlgmr.msra.gmra.mrb[4].mxu1 %vm439_vm0, %v467_v58 }
 0x168   : > { %2255 = vmatprep.mubr.msk.f32.mxu0 %vm2582_vm1, %v2581_v37  ;;  %2270 = vmatprep.mubr.msk.f32.mxu1 %vm2582_vm1, %v2581_v37 }
 0x22a   : > { %v649_v33 = vpop.f32.mrb[0].mxu0  ;;  %v720_v34 = vpop.f32.mrb[0].mxu1 }
 0x22b   : > { %v651_v35 = vpop.f32.mrb[1].mxu0  ;;  %v722_v36 = vpop.f32.mrb[1].mxu1  ;;  %v650_v56 = vadd.f32 %v649_v33, %v523_v45  ;;  %v721_v10 = vadd.f32 %v720_v34, %v531_v62 }
 0x22c   : > { %v723_v58 = vadd.f32 %v722_v36, %v535_v49  ;;  %v652_v63 = vadd.f32 %v651_v35, %v527_v57  ;;  %v1678_v49 = vld [vmem:[%s3233_s5 + $0x180] sm:$0xff]  ;;  %v1647_v57 = vld [vmem:[%s3233_s5 + $0x88] sm:$0xff] }
 0x232   : > { %v791_v47 = vpop.f32.mrb[2].mxu0  ;;  %v862_v48 = vpop.f32.mrb[2].mxu1 }
 0x233   : > { %v792_v50 = vadd.f32 %v791_v47, %v539_v42  ;;  %v793_v53 = vpop.f32.mrb[3].mxu0  ;;  %v864_v54 = vpop.f32.mrb[3].mxu1  ;;  %v863_v3 = vadd.f32 %v862_v48, %v547_v59  ;;  %v1681_v59 = vld [vmem:[%s3233_s5 + $0x198] sm:$0xff] }
 0x234   : > { %v865_v55 = vadd.f32 %v864_v54, %v551_v44  ;;  %v794_v60 = vadd.f32 %v793_v53, %v543_v52  ;;  %v1662_v54 = vld [vmem:[%s3233_s5 + $0x100] sm:$0xff] }
 0x235   : > { %2254 = vmatpush3.xpose.msra.mxu0 %v792_v50  ;;  %v1679_v50 = vld [vmem:[%s3233_s5 + $0x188] sm:$0xff] }
 0x236   : > { %2269 = vmatpush3.xpose.msra.mxu1 %v865_v55  ;;  %2258 = vmatprep.subr.mxu0 %v2581_v37  ;;  %v2403_v53 = vpack.c.bf16 %v1679_v50, %v1678_v49  ;;  %v1663_v55 = vld [vmem:[%s3233_s5 + $0x108] sm:$0xff]  ;;  %v1654_v49 = vld [vmem:[%s3233_s5 + $0xc0] sm:$0xff] }
 0x237   : > { %2278 = vmatprep.subr.mxu1 %v2581_v37  ;;  %v1655_v50 = vld [vmem:[%s3233_s5 + $0xc8] sm:$0xff] }
 0x238   : > { %2256 = vmatmul.mubr.f32.vlgmr.msra.gmra.mrb[6].mxu0 %v650_v56  ;;  %v1646_v56 = vld [vmem:[%s3233_s5 + $0x80] sm:$0xff] }
 0x239   : > { %2259 = vmatpush3.xpose.msra.mxu0 %v794_v60  ;;  %2271 = vmatmul.mubr.f32.vlgmr.msra.gmra.mrb[6].mxu1 %v723_v58  ;;  %v1680_v58 = vld [vmem:[%s3233_s5 + $0x190] sm:$0xff] }
 0x23a   : > { %v933_v1 = vpop.f32.mrb[4].mxu0  ;;  %v1004_v2 = vpop.f32.mrb[4].mxu1  ;;  %2260 = vmatprep.mubr.msk.f32.mxu0 %vm2582_vm1, %v2581_v37  ;;  %2263 = vmatprep.subr.mxu0 %v2581_v37 }
 0x23b   : > { %v2893_v5 = vadd.f32 %v1004_v2, %v563_v31  ;;  %v935_v6 = vpop.f32.mrb[5].mxu0  ;;  %v1006_v7 = vpop.f32.mrb[5].mxu1  ;;  %2280 = vmatprep.mubr.msk.f32.mxu1 %vm2582_vm1, %v2581_v37  ;;  %v934_v11 = vadd.f32 %v933_v1, %v555_v4  ;;  %v1630_v1 = vld [vmem:[%s3233_s5] sm:$0xff]  ;;  %v1664_v2 = vld [vmem:[%s3233_s5 + $0x110] sm:$0xff] }
 0x23c   : > { %v936_v8 = vadd.f32 %v935_v6, %v559_v61  ;;  %v2897_v9 = vadd.f32 %v1006_v7, %v567_v32  ;;  %2261 = vmatmul.mubr.f32.vlgmr.msra.gmra.mrb[8].mxu0 %v652_v63  ;;  %v2405_v61 = vpack.c.bf16 %v1663_v55, %v1662_v54  ;;  %v2371_v6 = vpack.c.bf16 %v1647_v57, %v1646_v56  ;;  %v1631_v7 = vld [vmem:[%s3233_s5 + $0x8] sm:$0xff]  ;;  %v1672_v54 = vld [vmem:[%s3233_s5 + $0x150] sm:$0xff]  ;;  %v1673_v55 = vld [vmem:[%s3233_s5 + $0x158] sm:$0xff] }
 0x23d   : > { %2264 = vmatpush3.xpose.msra.mxu0 %v863_v3  ;;  %2265 = vmatprep.mubr.msk.f32.mxu0 %vm2582_vm1, %v2581_v37  ;;  %v1665_v3 = vld [vmem:[%s3233_s5 + $0x118] sm:$0xff]  ;;  %v2387_v56 = vpack.c.bf16 %v1655_v50, %v1654_v49  ;;  %v1638_v57 = vld [vmem:[%s3233_s5 + $0x40] sm:$0xff] }
 0x23e   : > { %2279 = vmatpush3.msra.mxu1 %v936_v8  ;;  %2273 = vmatprep.subr.mxu0 %v2581_v37  ;;  %v2407_v8 = vpack.c.bf16 %v1681_v59, %v1680_v58  ;;  %v1639_v58 = vld [vmem:[%s3233_s5 + $0x48] sm:$0xff]  ;;  %v1656_v59 = vld [vmem:[%s3233_s5 + $0xd0] sm:$0xff] }
 0x23f   : > { %2288 = vmatprep.subr.mxu1 %v2581_v37 }
 0x240   : > { %2266 = vmatmul.mubr.f32.vlgmr.msra.gmra.mrb[10].mxu0 %v721_v10  ;;  %v1683_v10 = vld [vmem:[%s3233_s5 + $0x1a8] sm:$0xff] }
 0x241   : > { %2274 = vmatpush3.msra.mxu0 %v934_v11  ;;  %2275 = vmatprep.mubr.msk.f32.mxu0 %vm2582_vm1, %v2581_v37  ;;  %v1648_v11 = vld [vmem:[%s3233_s5 + $0x90] sm:$0xff] }
 0x242   : > { %2283 = vmatprep.subr.mxu0 %v2581_v37 }
 0x30b   : > { %v1075_v12 = vpop.f32.mrb[6].mxu0 }
 0x30c   : > { %v2257_v13 = vpop.f32.mrb[7].mxu0  ;;  %v1285_v14 = vpop.f32.mrb[6].mxu1  ;;  %v1290_v22 = vsel %vm1289_vm2, %v1075_v12, -inf }
 0x30d   : > { %v2272_v15 = vpop.f32.mrb[7].mxu1  ;;  %v1299_v16 = vsel %vm1289_vm2, %v1285_v14, -inf }
 0x30e   : > { %1300 = vmax.xlane.f32.xlu0 %v1299_v16  ;;  %v2373_v16 = vpack.c.bf16 %v1631_v7, %v1630_v1  ;;  %v1640_v1 = vld [vmem:[%s3233_s5 + $0x50] sm:$0xff] }
 0x30f   : > { %v1145_v17 = vpop.f32.mrb[8].mxu0 }
 0x310   : > { %v2262_v18 = vpop.f32.mrb[9].mxu0  ;;  %v1293_v19 = vsel %vm1289_vm2, %v1145_v17, -inf }
 0x311   : > { %1294 = vmax.xlane.f32.xlu1 %v1293_v19  ;;  %v1666_v19 = vld [vmem:[%s3233_s5 + $0x120] sm:$0xff] }
 0x313   : > { %v1215_v20 = vpop.f32.mrb[10].mxu0 }
 0x314   : > { %v2267_v21 = vpop.f32.mrb[11].mxu0  ;;  %v1296_v23 = vsel %vm1289_vm2, %v1215_v20, -inf }
 0x315   : > { %1291 = vmax.xlane.f32.xlu1 %v1290_v22  ;;  %v1684_v22 = vld [vmem:[%s3233_s5 + $0x1b0] sm:$0xff] }
 0x319   : > { %1297 = vmax.xlane.f32.xlu1 %v1296_v23  ;;  %v1685_v23 = vld [vmem:[%s3233_s5 + $0x1b8] sm:$0xff] }
 0x39b   : > { %v1301_v24 = vpop.xlane.xlu0 %1300 }
 0x39c   : > { %v1305_v25 = vsub.f32 %v1285_v14, %v1301_v24  ;;  %v2409_v14 = vpack.c.bf16 %v1665_v3, %v1664_v2  ;;  %v1650_v24 = vld [vmem:[%s3233_s5 + $0xa0] sm:$0xff]  ;;  %v1641_v2 = vld [vmem:[%s3233_s5 + $0x58] sm:$0xff] }
 0x39d   : > { %v1658_v3 = vld [vmem:[%s3233_s5 + $0xe0] sm:$0xff] }
 0x39e   : > { %v1295_v26 = vpop.xlane.xlu1 %1294  ;;  %v1312_v28 = vmul.f32 1.442695, %v1305_v25  ;;  %v1651_v25 = vld [vmem:[%s3233_s5 + $0xa8] sm:$0xff] }
 0x39f   : > { %v1303_v27 = vsub.f32 %v1145_v17, %v1295_v26  ;;  %v1632_v17 = vld [vmem:[%s3233_s5 + $0x10] sm:$0xff] }
 0x3a1   : > { %v1308_v29 = vmul.f32 1.442695, %v1303_v27 }
 0x3a2   : > { %v1292_v30 = vpop.xlane.xlu1 %1291 }
 0x3a3   : > { %2497 = vpow2.f32 %v1308_v29  ;;  %v1302_v31 = vsub.f32 %v1075_v12, %v1292_v30  ;;  %v1649_v12 = vld [vmem:[%s3233_s5 + $0x98] sm:$0xff]  ;;  %v2415_v29 = vpack.c.bf16 %v1685_v23, %v1684_v22  ;;  %v1668_v30 = vld [vmem:[%s3233_s5 + $0x130] sm:$0xff] }
 0x3a4   : > { %2499 = vpow2.f32 %v1312_v28  ;;  %v2375_v21 = vpack.c.bf16 %v1649_v12, %v1648_v11  ;;  %v1634_v28 = vld [vmem:[%s3233_s5 + $0x20] sm:$0xff]  ;;  %v1660_v11 = vld [vmem:[%s3233_s5 + $0xf0] sm:$0xff]  ;;  %v1661_v12 = vld [vmem:[%s3233_s5 + $0xf8] sm:$0xff] }
 0x3a5   : > { %v1306_v32 = vmul.f32 1.442695, %v1302_v31  ;;  %v1669_v31 = vld [vmem:[%s3233_s5 + $0x138] sm:$0xff]  ;;  %v1692_v22 = vld [vmem:[%s3233_s5 + $0x1f0] sm:$0xff] }
 0x3a6   : > { %v1298_v33 = vpop.xlane.xlu1 %1297  ;;  %v1693_v23 = vld [vmem:[%s3233_s5 + $0x1f8] sm:$0xff] }
 0x3a7   : > { %2501 = vpow2.f32 %v1306_v32  ;;  %v1304_v34 = vsub.f32 %v1215_v20, %v1298_v33  ;;  %v1667_v20 = vld [vmem:[%s3233_s5 + $0x128] sm:$0xff]  ;;  %v2379_v32 = vpack.c.bf16 %v1651_v25, %v1650_v24  ;;  %v2431_v24 = vpack.c.bf16 %v1693_v23, %v1692_v22  ;;  %v1676_v25 = vld [vmem:[%s3233_s5 + $0x170] sm:$0xff] }
 0x3a8   : > { %v2413_v26 = vpack.c.bf16 %v1667_v20, %v1666_v19  ;;  %v1635_v33 = vld [vmem:[%s3233_s5 + $0x28] sm:$0xff]  ;;  %v1674_v20 = vld [vmem:[%s3233_s5 + $0x160] sm:$0xff] }
 0x3a9   : > { %v1310_v35 = vmul.f32 1.442695, %v1304_v34  ;;  %v1686_v34 = vld [vmem:[%s3233_s5 + $0x1c0] sm:$0xff] }
 0x3ab   : > { %2503 = vpow2.f32 %v1310_v35  ;;  %v1687_v35 = vld [vmem:[%s3233_s5 + $0x1c8] sm:$0xff] }
 0x3ad   : > { %v2498_v36 = vpop.eup %2497 }
 0x3ae   : > { %v1317_v38 = vsel %vm1289_vm2, %v2498_v36, 0.0  ;;  %v2500_v39 = vpop.eup %2499 }
 0x3af   : > { %1318 = vadd.xlane.f32.xlu0 %v1317_v38  ;;  %v1323_v41 = vsel %vm1289_vm2, %v2500_v39, 0.0  ;;  %v1653_v38 = vld [vmem:[%s3233_s5 + $0xb8] sm:$0xff] }
 0x3b1   : > { %v2502_v40 = vpop.eup %2501 }
 0x3b2   : > { %v1314_v42 = vsel %vm1289_vm2, %v2502_v40, 0.0 }
 0x3b3   : > { %1324 = vadd.xlane.f32.xlu0 %v1323_v41  ;;  %1315 = vadd.xlane.f32.xlu1 %v1314_v42  ;;  %v1636_v41 = vld [vmem:[%s3233_s5 + $0x30] sm:$0xff]  ;;  %v2419_v42 = vpack.c.bf16 %v1687_v35, %v1686_v34 }
 0x3b5   : > { %v2504_v43 = vpop.eup %2503 }
 0x3b6   : > { %v1320_v44 = vsel %vm1289_vm2, %v2504_v43, 0.0 }
 0x3b7   : > { %1321 = vadd.xlane.f32.xlu1 %v1320_v44  ;;  %v1671_v44 = vld [vmem:[%s3233_s5 + $0x148] sm:$0xff] }
 0x43c   : > { %v1319_v45 = vpop.xlane.xlu0 %1318 }
 0x43d   : > { %2505 = vrcp.f32 %v1319_v45 }
 0x440   : > { %v1325_v46 = vpop.xlane.xlu0 %1324  ;;  %v1316_v47 = vpop.xlane.xlu1 %1315 }
 0x441   : > { %2507 = vrcp.f32 %v1325_v46  ;;  %v1637_v46 = vld [vmem:[%s3233_s5 + $0x38] sm:$0xff] }
 0x442   : > { %2509 = vrcp.f32 %v1316_v47  ;;  %v1688_v47 = vld [vmem:[%s3233_s5 + $0x1d0] sm:$0xff] }
 0x444   : > { %v1322_v48 = vpop.xlane.xlu1 %1321 }
 0x445   : > { %2511 = vrcp.f32 %v1322_v48  ;;  %v1689_v48 = vld [vmem:[%s3233_s5 + $0x1d8] sm:$0xff] }
 0x447   : > { %v2506_v51 = vpop.eup %2505 }
 0x448   : > { %v1335_v52 = vmul.f32 %v2506_v51, %v2498_v36  ;;  %v1652_v36 = vld [vmem:[%s3233_s5 + $0xb0] sm:$0xff] }
 0x449   : > { %v2383_v45 = vpack.c.bf16 %v1653_v38, %v1652_v36 }
 0x44a   : > { %2281 = vmatmul.mubr.msk.f32.vlgmr.msra.gmra.mrb[8].mxu1 %vm1289_vm2, %v1335_v52  ;;  %v2385_v52 = vpack.c.bf16 %v1637_v46, %v1636_v41 }
 0x44b   : > { %v2508_v60 = vpop.eup %2507  ;;  %2289 = vmatpush3.msra.mxu1 %v2897_v9  ;;  %2290 = vmatprep.mubr.msk.f32.mxu1 %vm2582_vm1, %v2581_v37  ;;  %v1682_v9 = vld [vmem:[%s3233_s5 + $0x1a0] sm:$0xff] }
 0x44c   : > { %v2510_v62 = vpop.eup %2509  ;;  %v1337_v63 = vmul.f32 %v2508_v60, %v2500_v39  ;;  %2404 = vmatprep.subr.bf16.mxu1 %v2403_v53  ;;  %v2411_v18 = vpack.c.bf16 %v1683_v10, %v1682_v9  ;;  %v2417_v39 = vpack.c.bf16 %v1669_v31, %v1668_v30  ;;  %v2423_v53 = vpack.c.bf16 %v1689_v48, %v1688_v47  ;;  %v1657_v60 = vld [vmem:[%s3233_s5 + $0xd8] sm:$0xff]  ;;  %v1643_v9 = vld [vmem:[%s3233_s5 + $0x68] sm:$0xff] }
 0x44d   : > { %v1334_v4 = vmul.f32 %v2510_v62, %v2502_v40  ;;  %v2381_v40 = vpack.c.bf16 %v1635_v33, %v1634_v28  ;;  %v2389_v62 = vpack.c.bf16 %v1639_v58, %v1638_v57 }
 0x44e   : > { %2291 = vmatmul.mubr.msk.f32.vlgmr.msra.gmra.mrb[10].mxu1 %vm1289_vm2, %v1337_v63  ;;  %v2391_v63 = vpack.c.bf16 %v1657_v60, %v1656_v59 }
 0x44f   : > { %v2512_v13 = vpop.eup %2511  ;;  %2276 = vmatmul.mubr.msk.f32.vlgmr.msra.gmra.mrb[12].mxu0 %vm1289_vm2, %v1334_v4  ;;  %2406 = vmatpush3.bf16.msra.mxu1 %v2405_v61  ;;  %v2425_v61 = vpack.c.bf16 %v1673_v55, %v1672_v54  ;;  %v1659_v4 = vld [vmem:[%s3233_s5 + $0xe8] sm:$0xff]  ;;  %v2583_v54 = vmov 0.0|0.0   ;;  %v1873_v55 = vld [vmem:[%s3237_s9 + $0x10] sm:$0xff] }
 0x450   : > { %v1336_v15 = vmul.f32 %v2512_v13, %v2504_v43  ;;  %2284 = vmatpush3.msra.mxu0 %v2893_v5  ;;  %2285 = vmatprep.mubr.msk.f32.mxu0 %vm2582_vm1, %v2581_v37  ;;  %v1633_v5 = vld [vmem:[%s3233_s5 + $0x18] sm:$0xff]  ;;  %v1670_v43 = vld [vmem:[%s3233_s5 + $0x140] sm:$0xff]  ;;  %v2395_v7 = vpack.c.bf16 %v1659_v4, %v1658_v3 }
 0x451   : > { %2372 = vmatprep.subr.bf16.mxu0 %v2371_v6  ;;  %2408 = vmatprep.subr.bf16.mxu1 %v2407_v8  ;;  %v2377_v27 = vpack.c.bf16 %v1633_v5, %v1632_v17  ;;  %v2421_v51 = vpack.c.bf16 %v1671_v44, %v1670_v43  ;;  %v2393_v6 = vpack.c.bf16 %v1641_v2, %v1640_v1  ;;  %v1642_v8 = vld [vmem:[%s3233_s5 + $0x60] sm:$0xff]  ;;  %v1645_v17 = vld [vmem:[%s3233_s5 + $0x78] sm:$0xff] }
 0x452   : > { %v2397_v10 = vpack.c.bf16 %v1643_v9, %v1642_v8  ;;  %v1690_v13 = vld [vmem:[%s3233_s5 + $0x1e0] sm:$0xff]  ;;  %v1962_v8 = vld [vmem:[%s3239_s11 + $0x10] sm:$0xff]  ;;  %v1963_v9 = vld [vmem:[%s3239_s11 + $0x18] sm:$0xff] }
 0x453   : > { %2286 = vmatmul.mubr.msk.f32.vlgmr.msra.gmra.mrb[14].mxu0 %vm1289_vm2, %v1336_v15  ;;  %2410 = vmatpush3.bf16.msra.mxu1 %v2409_v14  ;;  %v2399_v14 = vpack.c.bf16 %v1661_v12, %v1660_v11  ;;  %v1691_v15 = vld [vmem:[%s3233_s5 + $0x1e8] sm:$0xff]  ;;  %v2144_v1 = vld [vmem:[%s3236_s8] ss:$0 sm:$0xff] }
 0x454   : > { %2374 = vmatpush3.bf16.msra.mxu0 %v2373_v16  ;;  %2412 = vmatprep.subr.bf16.mxu1 %v2411_v18  ;;  %v1644_v16 = vld [vmem:[%s3233_s5 + $0x70] sm:$0xff]  ;;  %v2427_v18 = vpack.c.bf16 %v1691_v15, %v1690_v13  ;;  %v1960_v4 = vld [vmem:[%s3239_s11] sm:$0xff]  ;;  %v1965_v12 = vld [vmem:[%s3239_s11 + $0x28] sm:$0xff] }
 0x455   : > { %2376 = vmatprep.subr.bf16.mxu0 %v2375_v21  ;;  %v2401_v19 = vpack.c.bf16 %v1645_v17, %v1644_v16  ;;  %v1675_v21 = vld [vmem:[%s3233_s5 + $0x168] sm:$0xff]  ;;  %v1964_v11 = vld [vmem:[%s3239_s11 + $0x20] sm:$0xff]  ;;  %v1967_v15 = vld [vmem:[%s3239_s11 + $0x38] sm:$0xff] }
 0x456   : > { %v2429_v5 = vpack.c.bf16 %v1675_v21, %v1674_v20  ;;  %v2448_v13 = vpack.c.bf16 %v1965_v12, %v1964_v11  ;;  %v2145_v17 = vld [vmem:[%s3238_s10] ss:$0 sm:$0xff] }
 0x457   : > { %2414 = vmatpush3.bf16.msra.mxu1 %v2413_v26  ;;  %v1677_v26 = vld [vmem:[%s3233_s5 + $0x178] sm:$0xff] }
 0x458   : > { %2378 = vmatpush3.bf16.msra.mxu0 %v2377_v27  ;;  %2416 = vmatprep.subr.bf16.mxu1 %v2415_v29  ;;  %v2433_v27 = vpack.c.bf16 %v1677_v26, %v1676_v25  ;;  %v2147_v25 = vld [vmem:[%s3240_s12] ss:$0 sm:$0xff] }
 0x459   : > { %2380 = vmatprep.subr.bf16.mxu0 %v2379_v32 }
 0x45b   : > { %2418 = vmatpush3.bf16.msra.mxu1 %v2417_v39 }
 0x45c   : > { %2382 = vmatpush3.bf16.msra.mxu0 %v2381_v40  ;;  %2420 = vmatprep.subr.bf16.mxu1 %v2419_v42  ;;  %v2142_v40 = vld [vmem:[%s3234_s6] ss:$0 sm:$0xff] }
 0x45d   : > { %2384 = vmatprep.subr.bf16.mxu0 %v2383_v45 }
 0x45f   : > { %2422 = vmatpush3.bf16.msra.mxu1 %v2421_v51 }
 0x460   : > { %2386 = vmatpush3.bf16.msra.mxu0 %v2385_v52  ;;  %2424 = vmatprep.subr.bf16.mxu1 %v2423_v53  ;;  %v1871_v52 = vld [vmem:[%s3237_s9] sm:$0xff] }
 0x461   : > { %2388 = vmatprep.subr.bf16.mxu0 %v2387_v56  ;;  %v1874_v56 = vld [vmem:[%s3237_s9 + $0x18] sm:$0xff] }
 0x462   : > { %v2439_v57 = vpack.c.bf16 %v1874_v56, %v1873_v55 }
 0x463   : > { %2426 = vmatpush3.bf16.msra.mxu1 %v2425_v61 }
 0x464   : > { %2390 = vmatpush3.bf16.msra.mxu0 %v2389_v62  ;;  %2428 = vmatprep.subr.bf16.mxu1 %v2427_v18  ;;  %v2143_v62 = vld [vmem:[%s3235_s7] ss:$0 sm:$0xff] }
 0x465   : > { %2392 = vmatprep.subr.bf16.mxu0 %v2391_v63 }
 0x467   : > { %2430 = vmatpush3.bf16.msra.mxu1 %v2429_v5 }
 0x468   : > { %2394 = vmatpush3.bf16.msra.mxu0 %v2393_v6  ;;  %2432 = vmatprep.subr.bf16.mxu1 %v2431_v24  ;;  %v1961_v6 = vld [vmem:[%s3239_s11 + $0x8] sm:$0xff] }
 0x469   : > { %2396 = vmatprep.subr.bf16.mxu0 %v2395_v7  ;;  %v2442_v7 = vpack.c.bf16 %v1961_v6, %v1960_v4 }
 0x46b   : > { %2434 = vmatpush3.bf16.msra.mxu1 %v2433_v27 }
 0x46c   : > { %2398 = vmatpush3.bf16.msra.mxu0 %v2397_v10  ;;  %2441 = vmatprep.subr.bf16.mxu1 %v2583_v54  ;;  %v2445_v10 = vpack.c.bf16 %v1963_v9, %v1962_v8 }
 0x46d   : > { %2400 = vmatprep.subr.bf16.mxu0 %v2399_v14  ;;  %v1966_v14 = vld [vmem:[%s3239_s11 + $0x30] sm:$0xff] }
 0x46e   : > { %v2451_v16 = vpack.c.bf16 %v1967_v15, %v1966_v14 }
 0x470   : > { %2402 = vmatpush3.bf16.msra.mxu0 %v2401_v19 }
 0x471   : > { %2435 = vmatprep.subr.bf16.mxu0 %v2583_v54 }
 0x51d   : > { %v1480_v28 = vpop.f32.mrb[8].mxu1 }
 0x51e   : > { %v2282_v29 = vpop.f32.mrb[9].mxu1  ;;  %1765 = vmatprep.mubr.f32.mxu0 %v1480_v28 }
 0x521   : > { %v1626_v30 = vpop.f32.mrb[10].mxu1 }
 0x522   : > { %v1407_v31 = vpop.f32.mrb[12].mxu0  ;;  %v2292_v32 = vpop.f32.mrb[11].mxu1  ;;  %1835 = vmatprep.mubr.f32.mxu1 %v1626_v30 }
 0x523   : > { %v2277_v33 = vpop.f32.mrb[13].mxu0  ;;  %1766 = vmatmul.mubr.f32.vlgmr.msra.gmra.mrb[16].mxu0 %v1407_v31 }
 0x524   : > { %2301 = vmatprep.mubr.msk.f32.mxu0 %vm2582_vm1, %v2581_v37 }
 0x526   : > { %v1553_v34 = vpop.f32.mrb[14].mxu0 }
 0x527   : > { %v2287_v35 = vpop.f32.mrb[15].mxu0  ;;  %1836 = vmatmul.mubr.f32.vlgmr.msra.gmra.mrb[12].mxu1 %v1553_v34 }
 0x528   : > { %2320 = vmatprep.mubr.msk.f32.mxu1 %vm2582_vm1, %v2581_v37  ;;  %2443 = vmatpush3.bf16.msra.mxu1 %v2442_v7 }
 0x529   : > { %2444 = vmatprep.subr.bf16.mxu1 %v2583_v54 }
 0x52c   : > { %2446 = vmatpush3.bf16.msra.mxu1 %v2445_v10 }
 0x52d   : > { %2447 = vmatprep.subr.bf16.mxu1 %v2583_v54 }
 0x530   : > { %2449 = vmatpush3.bf16.msra.mxu1 %v2448_v13 }
 0x531   : > { %2450 = vmatprep.subr.bf16.mxu1 %v2583_v54 }
 0x534   : > { %2452 = vmatpush3.bf16.msra.mxu1 %v2451_v16 }
 0x5f6   : > { %v2201_v36 = vpop.f32.mrb[16].mxu0 }
 0x5f7   : > { %v2202_v38 = vpop.f32.mrb[17].mxu0 }
 0x5f8   : > { %v2203_v39 = vadd.f32 %v2202_v38, %v2201_v36 }
 0x5fa   : > { %v2236_v41 = vpop.f32.mrb[12].mxu1  ;;  %v1768_v43 = vadd.f32 %v2203_v39, %v2142_v40 }
 0x5fb   : > { %v2237_v42 = vpop.f32.mrb[13].mxu1 }
 0x5fc   : > { %v2238_v44 = vadd.f32 %v2237_v42, %v2236_v41 }
 0x5fe   : > { %v1838_v45 = vadd.f32 %v2238_v44, %v1768_v43 }
 0x600   : > { %v3124_v46 = vadd.f32 %v1838_v45, %v2708_v0  ;;  %v1872_v0 = vld [vmem:[%s3237_s9 + $0x8] sm:$0xff] }
 0x601   : > { %v2436_v53 = vpack.c.bf16 %v1872_v0, %v1871_v52 }
 0x602   : > { %v1844_v47 = vsel %vm439_vm0, %v3124_v46, 0.0 }
 0x603   : > { %1845 = vadd.xlane.f32.xlu0 %v1844_v47  ;;  %2437 = vmatpush3.bf16.msra.mxu0 %v2436_v53 }
 0x604   : > { %2438 = vmatprep.subr.bf16.mxu0 %v2583_v54 }
 0x607   : > { %2440 = vmatpush3.bf16.msra.mxu0 %v2439_v57 }
 0x690   : > { %v1846_v37 = vpop.xlane.xlu0 %1845 }
 0x691   : > { %v1847_v48 = vmul.f32 0.03125, %v1846_v37 }
 0x693   : > { %v1848_v49 = vsub.f32 %v3124_v46, %v1847_v48 }
 0x695   : > { %v1849_v50 = vmul.f32 %v1848_v49, %v1848_v49 }
 0x697   : > { %v1850_v51 = vsel %vm439_vm0, %v1849_v50, 0.0 }
 0x698   : > { %1851 = vadd.xlane.f32.xlu1 %v1850_v51 }
 0x725   : > { %v1852_v58 = vpop.xlane.xlu1 %1851 }
 0x726   : > { %v1853_v59 = vmul.f32 0.03125, %v1852_v58 }
 0x728   : > { %v1854_v60 = vadd.f32 1e-05, %v1853_v59 }
 0x72a   : > { %2513 = vrsqrt.f32 %v1854_v60 }
 0x734   : > { %v2514_v61 = vpop.eup %2513 }
 0x735   : > { %v1856_v63 = vmul.f32 %v2514_v61, %v1848_v49 }
 0x737   : > { %v1863_v2 = vmul.f32 %v2143_v62, %v1856_v63 }
 0x739   : > { %v1870_v3 = vadd.f32 %v2144_v1, %v1863_v2 }
 0x73b   : > { %2302 = vmatmul.mubr.msk.f32.vlgmr.msra.gmra.mrb[18].mxu0 %vm439_vm0, %v1870_v3 }
 0x80e   : > { %v1951_v18 = vpop.f32.mrb[18].mxu0 }
 0x80f   : > { %v1952_v19 = vadd.f32 %v2145_v17, %v1951_v18  ;;  %v2303_v20 = vpop.f32.mrb[19].mxu0 }
 0x811   : > { %v1956_v21 = vmul.f32 0.70710677, %v1952_v19  ;;  %v1955_v22 = vmul.f32 0.5, %v1952_v19 }
 0x813   : > { %2515 = verf.f32 %v1956_v21 }
 0x81d   : > { %v2516_v5 = vpop.eup %2515 }
 0x81e   : > { %v1958_v23 = vadd.f32 1.0, %v2516_v5 }
 0x820   : > { %v1959_v24 = vmul.f32 %v1958_v23, %v1955_v22 }
 0x822   : > { %2321 = vmatmul.mubr.msk.f32.vlgmr.msra.gmra.mrb[14].mxu1 %vm1975_vm3, %v1959_v24 }
 0x8f5   : > { %v2045_v26 = vpop.f32.mrb[14].mxu1 }
 0x8f6   : > { %v2046_v27 = vadd.f32 %v2147_v25, %v2045_v26  ;;  %v2322_v28 = vpop.f32.mrb[15].mxu1 }
 0x8f8   : > { %v2049_v29 = vadd.f32 %v2046_v27, %v3124_v46 }
 0x8fa   : > { %2050 = vst.msk [vmem:[%s431_s23] sm:$0xff] %vm439_vm0, %v2049_v29 }
 0x8fb   : > { %2530 = shalt.err (!%p2527_p3)
}
 0x8fc   : > { %s2531_s21 = scalar_lea.hbm %s3185_s15, 128  ;;  %s2535_s23 = scalar_lea.hbm %s3241_s13, 256 }
 0x8fd   : > { %p2532_p4 = scmp.ne.s32.totalorder %s3185_s15, %s2531_s21  ;;  %p2536_p9 = scmp.lt.u32.totalorder %s3185_s15, %s3241_s13 }
 0x8fe   : > { %p2537_p10 = scmp.lt.u32.totalorder %s2535_s23, %s2531_s21  ;;  %p2539_p12 = scmp.lt.u32.totalorder %s2531_s21, %s3185_s15 }
 0x8ff   : > { %p2533_p7 = pnand %p2532_p4, %p2693_p5 }
 0x900   : > { %p2538_p11 = por %p2537_p10, %p2536_p9 }
 0x901   : > { %p2534_p8 = pneg %p2533_p7 }
 0x902   : > { %p2540_p13 = por %p2539_p12, %p2538_p11 }
 0x904   : > { %p2541_p0 = pnand %p2540_p13, %p2534_p8 }
 0x906   : > { %2544 = shalt.err (!%p2541_p0)
}
 0x907   : > { %2453 = dma.vmem_to_hbm [thread:$0]  (%p2693_p5), %s3187_s1, 128, %s3185_s15, %s2052_s16  }
 0x908 PF: > { %p2459_p1 = scmp.ge.s32.totalorder %s2579_s28, 2  ;;  %s2077_s29 = sand.u32 1, %s2567_s25  }
 0x909   : > { %s2078_s20 = scalar_lea.sflag [#allocation3], %s2077_s29 }
 0x90a   : > { %p2456_p2 = pnand %p2459_p1, %p2697_p6 }
 0x90c   : > { %2562 = dma.done.wait (!%p2456_p2), %s2078_s20, 128  }
 0x90d   : > { %2564 = vsyncadd (!%p2456_p2), %s2078_s20, 4294967168  ;;  %s3251_s0 = sld [smem:[#allocation5_spill]]  ;;  %s3252_s27 = sld [smem:[#allocation6_spill]] }
 0x90e   : > { %p23_p3 = scmp.ge.s32.totalorder %s2680_s14, 4   ;;  %s3253_s25 = smov %s2571_s26 }
 0x90f   : > { %s3255_s28 = smov %s2680_s14 }
 0x910   :  { %25 = sbr.rel (!%p23_p3) target bundleno = 6 (0x6), region = 107 }
 0x913   : > { %s3254_s26 = smov %s3251_s0 }
 0x917   :  { %2083 = vsyncpa [#allocation3], 1 }
 0x918   :  { %2085 = vsyncpa [#allocation3 + $0x1], 1 }

</bundles_post_ra>
